<compile_context>
chip_gen: v6e
topology: v6e:2x2x1
jax: 0.10.0
libtpu: 0.0.40
codegen_flags: <defaults>
</compile_context>

<pallas_src>
import functools
import math

import jax
import jax.numpy as jnp
from jax import lax
from jax.experimental import pallas as pl
from jax.experimental.pallas import tpu as pltpu  # noqa: F401  (TPU backend)

LANE = 128


def _ceil_to(x, m):
    return ((x + m - 1) // m) * m


def _layernorm(x, g, b, eps=1e-5):
    # one-pass stats: mean and E[x^2] are independent reductions; var = E[x^2] - mu^2
    mu = jnp.mean(x, axis=-1, keepdims=True)
    ms = jnp.mean(x * x, axis=-1, keepdims=True)
    var = ms - mu * mu
    return (x - mu) * lax.rsqrt(var + eps) * g + b


# ----------------------------- fused Pallas kernel ---------------------------

def _fused_forward_kernel(x_ref, w_ref, o_ref, *, layout, layer_dims, n_heads):
    # layout: name -> (row_offset, rows_used, cols_used) into the packed weight slab.
    def blk(name):
        off, r, c = layout[name]
        return w_ref[off:off + r, :c]          # static slice: no runtime cost

    x = x_ref[...]

    # input embedding (cat([h, PE]) done in the wrapper)
    h = jnp.dot(x, blk("emb_w"), preferred_element_type=jnp.float32) + blk("emb_b")

    # GraphTransformer layers: full-graph dense attention + LayerNorm variant
    for li, (din, dout) in enumerate(layer_dims):
        dh = dout // n_heads
        p = f"l{li}_"

        # fused bias-free Q/K/V projection; 1/sqrt(dh) already folded into Q cols
        qkv = jnp.dot(h, blk(p + "Wqkv"), preferred_element_type=jnp.float32)  # [N, 3*dout]
        wo = blk(p + "Wo")                                                     # [dout, dout]

        # per-head attention kept in registers; each head's slice of the O
        # projection is folded into an accumulator (no scratch, no concat).
        acc = None
        for hd in range(n_heads):
            lo = hd * dh
            qh = qkv[:, lo:lo + dh]
            kh = qkv[:, dout + lo:dout + lo + dh]
            vh = qkv[:, 2 * dout + lo:2 * dout + lo + dh]
            # q.k^T with the transpose folded into the contraction dims
            s = lax.dot_general(qh, kh, (((1,), (1,)), ((), ())),
                                preferred_element_type=jnp.float32)            # [N, N]
            e = jnp.exp(jnp.clip(s, -5.0, 5.0))                                # DGL scaled_exp clamp
            num = jnp.dot(e, vh, preferred_element_type=jnp.float32)           # wV
            den = jnp.sum(e, axis=-1, keepdims=True)                           # z
            ah = num * pl.reciprocal(den, approx=True)                         # [N, dh]
            oh = jnp.dot(ah, wo[lo:lo + dh, :], preferred_element_type=jnp.float32)
            acc = oh if acc is None else acc + oh

        h_o = acc + blk(p + "bo")
        if din == dout:                          # residual only when shapes match (DGL)
            h_o = h_o + h
        h1 = _layernorm(h_o, blk(p + "ln1_g"), blk(p + "ln1_b"))

        # FFN (hidden zero-padded to 128 lanes at pack time; extra lanes are exact zeros)
        f = jnp.dot(h1, blk(p + "W1"), preferred_element_type=jnp.float32) + blk(p + "b1")
        f = jnp.maximum(f, 0.0)
        f = jnp.dot(f, blk(p + "W2"), preferred_element_type=jnp.float32) + blk(p + "b2")
        h = _layernorm(f + h1, blk(p + "ln2_g"), blk(p + "ln2_b"))

    # MLPReadout (L=2): widths zero-padded to 128 lanes -> lane-dense intermediates
    y = jnp.maximum(
        jnp.dot(h, blk("mlp0_w"), preferred_element_type=jnp.float32) + blk("mlp0_b"), 0.0)
    y = jnp.maximum(
        jnp.dot(y, blk("mlp1_w"), preferred_element_type=jnp.float32) + blk("mlp1_b"), 0.0)
    y = jnp.dot(y, blk("mlp2_w"), preferred_element_type=jnp.float32) + blk("mlp2_b")
    o_ref[...] = y                               # lane-dense 128-wide store


# ----------------------------- params & packing ------------------------------

def init_params(key, in_dim, hidden, out_dim, n_heads, n_layers, n_classes):
    def dense(k, din, dout, scale=0.1):
        kw, kb = jax.random.split(k)
        w = scale * jax.random.normal(kw, (din, dout), jnp.float32)
        b = scale * jax.random.normal(kb, (dout,), jnp.float32)
        return w, b

    keys = jax.random.split(key, 2 + n_layers)
    params = {}
    # embedding_h : Linear(in_dim + 3, hidden)
    params["emb_w"], params["emb_b"] = dense(keys[0], in_dim + 3, hidden)

    layers = []
    for li in range(n_layers):
        din = hidden
        dout = hidden if li < n_layers - 1 else out_dim
        lk = jax.random.split(keys[1 + li], 6)
        lp = {"din": din, "dout": dout}
        lp["Wq"], _ = dense(lk[0], din, dout)    # Q/K/V: use_bias=False
        lp["Wk"], _ = dense(lk[1], din, dout)
        lp["Wv"], _ = dense(lk[2], din, dout)
        lp["Wo"], lp["bo"] = dense(lk[3], dout, dout)
        lp["ln1_g"] = jnp.ones((dout,), jnp.float32)
        lp["ln1_b"] = jnp.zeros((dout,), jnp.float32)
        lp["W1"], lp["b1"] = dense(lk[4], dout, 2 * dout)    # FFN_layer1
        lp["W2"], lp["b2"] = dense(lk[5], 2 * dout, dout)    # FFN_layer2
        lp["ln2_g"] = jnp.ones((dout,), jnp.float32)
        lp["ln2_b"] = jnp.zeros((dout,), jnp.float32)
        layers.append(lp)
    params["layers"] = layers

    # MLPReadout(out_dim, n_classes), L=2: out -> out//2 -> out//4 -> n_classes
    mk = jax.random.split(keys[1 + n_layers], 3)
    params["mlp0_w"], params["mlp0_b"] = dense(mk[0], out_dim, out_dim // 2)
    params["mlp1_w"], params["mlp1_b"] = dense(mk[1], out_dim // 2, out_dim // 4)
    params["mlp2_w"], params["mlp2_b"] = dense(mk[2], out_dim // 4, n_classes)
    return params


class _SlabPacker:
    """Packs many small weights into one lane-padded [R, 128] f32 slab.
    Every block starts on an 8-row (sublane) boundary so in-kernel slices are aligned."""

    def __init__(self):
        self._blocks = []
        self.layout = {}
        self._row = 0

    def add(self, name, arr):
        arr = jnp.asarray(arr, jnp.float32)
        if arr.ndim == 1:
            arr = arr[None, :]
        r, c = arr.shape
        assert c <= LANE, f"{name}: width {c} exceeds one lane slab"
        rp = _ceil_to(r, 8)
        block = jnp.zeros((rp, LANE), jnp.float32).at[:r, :c].set(arr)
        self._blocks.append(block)
        self.layout[name] = (self._row, r, c)
        self._row += rp

    def finish(self):
        return jnp.concatenate(self._blocks, axis=0)


def pack_params(params, n_heads):
    pk = _SlabPacker()
    pk.add("emb_w", params["emb_w"])
    pk.add("emb_b", params["emb_b"])

    layer_dims = []
    for li, lp in enumerate(params["layers"]):
        din, dout = lp["din"], lp["dout"]
        dh = dout // n_heads
        layer_dims.append((din, dout))
        p = f"l{li}_"
        # fold the 1/sqrt(dh) attention scale into the Q columns of the fused QKV weight
        wqkv = jnp.concatenate([lp["Wq"] / math.sqrt(dh), lp["Wk"], lp["Wv"]], axis=1)
        pk.add(p + "Wqkv", wqkv)
        pk.add(p + "Wo", lp["Wo"])
        pk.add(p + "bo", lp["bo"])
        pk.add(p + "ln1_g", lp["ln1_g"])
        pk.add(p + "ln1_b", lp["ln1_b"])
        # FFN hidden zero-padded to 128 lanes (ReLU(0)*0 == 0 -> results unchanged)
        hid = lp["W1"].shape[1]
        hid_pad = _ceil_to(hid, LANE)
        pk.add(p + "W1", jnp.zeros((dout, hid_pad), jnp.float32).at[:, :hid].set(lp["W1"]))
        pk.add(p + "b1", jnp.zeros((hid_pad,), jnp.float32).at[:hid].set(lp["b1"]))
        pk.add(p + "W2", jnp.zeros((hid_pad, dout), jnp.float32).at[:hid, :].set(lp["W2"]))
        pk.add(p + "b2", lp["b2"])
        pk.add(p + "ln2_g", lp["ln2_g"])
        pk.add(p + "ln2_b", lp["ln2_b"])

    # MLPReadout: zero-pad hidden/output widths to 128 lanes (exact zeros, same results)
    d0 = params["mlp0_w"].shape[0]
    h0 = params["mlp0_w"].shape[1]
    h1 = params["mlp1_w"].shape[1]
    nc = params["mlp2_w"].shape[1]
    pk.add("mlp0_w", jnp.zeros((d0, LANE), jnp.float32).at[:, :h0].set(params["mlp0_w"]))
    pk.add("mlp0_b", jnp.zeros((LANE,), jnp.float32).at[:h0].set(params["mlp0_b"]))
    pk.add("mlp1_w", jnp.zeros((LANE, LANE), jnp.float32).at[:h0, :h1].set(params["mlp1_w"]))
    pk.add("mlp1_b", jnp.zeros((LANE,), jnp.float32).at[:h1].set(params["mlp1_b"]))
    pk.add("mlp2_w", jnp.zeros((LANE, LANE), jnp.float32).at[:h1, :nc].set(params["mlp2_w"]))
    pk.add("mlp2_b", jnp.zeros((LANE,), jnp.float32).at[:nc].set(params["mlp2_b"]))

    slab = pk.finish()
    return slab, pk.layout, tuple(layer_dims)


# --------------------------------- wrapper ------------------------------------

def make_forward(layout, layer_dims, n_heads, n_classes):
    kernel = functools.partial(_fused_forward_kernel, layout=layout,
                               layer_dims=layer_dims, n_heads=n_heads)

    def forward(slab, h, pe):
        x = jnp.concatenate([h, pe], axis=1)            # cat([h, PE], dim=1)
        n = x.shape[0]

        # advisory cost estimate for XLA scheduling of the fused custom call
        hidden = layer_dims[0][0]
        flops = 2 * n * x.shape[1] * hidden
        transcendentals = 0
        for (din, dout) in layer_dims:
            dh = dout // n_heads
            flops += 2 * n * din * 3 * dout                        # fused QKV
            flops += n_heads * (4 * n * n * dh + 2 * n * dh * dout)  # attention + O proj
            flops += 4 * n * dout * LANE                           # FFN (padded hidden)
            transcendentals += n_heads * n * n + 4 * n             # exp + recip/rsqrt
        d_last = layer_dims[-1][1]
        flops += 2 * n * (d_last * LANE + 2 * LANE * LANE)         # MLPReadout
        bytes_accessed = 4 * (x.size + slab.size + n * LANE)
        cost = pl.CostEstimate(flops=int(flops),
                               transcendentals=int(transcendentals),
                               bytes_accessed=int(bytes_accessed))

        y_pad = pl.pallas_call(
            kernel,
            out_shape=jax.ShapeDtypeStruct((n, LANE), jnp.float32),
            cost_estimate=cost,
        )(x, slab)                                      # 2 inputs -> 2 DMAs total
        return y_pad[:, :n_classes]

    return forward


# --------------------------------- main ----------------------------------------

if __name__ == "__main__":
    # small, shape-consistent config
    N_NODES = 16
    IN_DIM = 4        # node feature dim (PE adds 3 -> embedding input = 7)
    HIDDEN = 32       # GT_hidden_dim
    OUT_DIM = 32      # GT_out_dim
    N_HEADS = 4
    GT_LAYERS = 2
    N_CLASSES = 4

    key = jax.random.PRNGKey(0)
    k_h, k_pe, k_p = jax.random.split(key, 3)
    h = jax.random.normal(k_h, (N_NODES, IN_DIM), jnp.float32)
    pe = jax.random.normal(k_pe, (N_NODES, 3), jnp.float32)    # g.ndata['PE']

    params = init_params(k_p, IN_DIM, HIDDEN, OUT_DIM, N_HEADS, GT_LAYERS, N_CLASSES)
    slab, layout, layer_dims = pack_params(params, N_HEADS)

    forward = make_forward(layout, layer_dims, N_HEADS, N_CLASSES)
    fwd = jax.jit(forward)
    out = fwd(slab, h, pe)
    out = jax.block_until_ready(out)

    assert out.shape == (N_NODES, N_CLASSES)
    assert bool(jnp.all(jnp.isfinite(out)))
    print("KERNEL_OK")
</pallas_src>

<mosaic_0001>
module attributes {stable_mosaic.version = 11 : i64} {
  func.func @_fused_forward_kernel(%arg0: memref<16x7xf32, #tpu.memory_space<vmem>>, %arg1: memref<888x128xf32, #tpu.memory_space<vmem>>, %arg2: memref<16x128xf32, #tpu.memory_space<vmem>>) attributes {dimension_semantics = [], scalar_prefetch = 0 : i64, scratch_operands = 0 : i64, tpu.core_type = #tpu.core_type<tc>} {
    %c0 = arith.constant 0 : index
    %c0_0 = arith.constant 0 : index
    %0 = vector.load %arg0[%c0, %c0_0] : memref<16x7xf32, #tpu.memory_space<vmem>>, vector<16x7xf32>
    %c0_1 = arith.constant 0 : index
    %c0_2 = arith.constant 0 : index
    %1 = vector.load %arg1[%c0_1, %c0_2] : memref<888x128xf32, #tpu.memory_space<vmem>>, vector<7x32xf32>
    %cst = arith.constant dense<0.000000e+00> : vector<16x32xf32>
    %2 = tpu.matmul %0, %1, %cst {dimension_numbers = #tpu.dot_dimension_numbers<[1], [0], [0], [1], [0, 0, 1, 1], [], []>} : vector<16x7xf32>, vector<7x32xf32>, vector<16x32xf32> -> vector<16x32xf32>
    %c8 = arith.constant 8 : index
    %c0_3 = arith.constant 0 : index
    %3 = vector.load %arg1[%c8, %c0_3] : memref<888x128xf32, #tpu.memory_space<vmem>>, vector<1x32xf32>
    %4 = vector.broadcast %3 : vector<1x32xf32> to vector<16x32xf32>
    %5 = arith.addf %2, %4 : vector<16x32xf32>
    %c16 = arith.constant 16 : index
    %c0_4 = arith.constant 0 : index
    %6 = vector.load %arg1[%c16, %c0_4] : memref<888x128xf32, #tpu.memory_space<vmem>>, vector<32x96xf32>
    %cst_5 = arith.constant dense<0.000000e+00> : vector<16x96xf32>
    %7 = tpu.matmul %5, %6, %cst_5 {dimension_numbers = #tpu.dot_dimension_numbers<[1], [0], [0], [1], [0, 0, 1, 1], [], []>} : vector<16x32xf32>, vector<32x96xf32>, vector<16x96xf32> -> vector<16x96xf32>
    %c48 = arith.constant 48 : index
    %c0_6 = arith.constant 0 : index
    %8 = vector.load %arg1[%c48, %c0_6] : memref<888x128xf32, #tpu.memory_space<vmem>>, vector<32x32xf32>
    %9 = vector.extract_strided_slice %7 {offsets = [0, 0], sizes = [16, 8], strides = [1, 1]} : vector<16x96xf32> to vector<16x8xf32>
    %10 = vector.extract_strided_slice %7 {offsets = [0, 32], sizes = [16, 8], strides = [1, 1]} : vector<16x96xf32> to vector<16x8xf32>
    %11 = vector.extract_strided_slice %7 {offsets = [0, 64], sizes = [16, 8], strides = [1, 1]} : vector<16x96xf32> to vector<16x8xf32>
    %cst_7 = arith.constant dense<0.000000e+00> : vector<16x16xf32>
    %12 = tpu.matmul %9, %10, %cst_7 {dimension_numbers = #tpu.dot_dimension_numbers<[1], [1], [0], [0], [0, 0, 1, 0], [], []>} : vector<16x8xf32>, vector<16x8xf32>, vector<16x16xf32> -> vector<16x16xf32>
    %cst_8 = arith.constant -5.000000e+00 : f32
    %cst_9 = arith.constant 5.000000e+00 : f32
    %13 = vector.broadcast %cst_8 : f32 to vector<16x16xf32>
    %14 = arith.maximumf %13, %12 : vector<16x16xf32>
    %15 = vector.broadcast %cst_9 : f32 to vector<16x16xf32>
    %16 = arith.minimumf %15, %14 : vector<16x16xf32>
    %17 = math.exp %16 : vector<16x16xf32>
    %cst_10 = arith.constant dense<0.000000e+00> : vector<16x8xf32>
    %18 = tpu.matmul %17, %11, %cst_10 {dimension_numbers = #tpu.dot_dimension_numbers<[1], [0], [0], [1], [0, 0, 1, 1], [], []>} : vector<16x16xf32>, vector<16x8xf32>, vector<16x8xf32> -> vector<16x8xf32>
    %cst_11 = arith.constant dense<0.000000e+00> : vector<16xf32>
    %19 = vector.multi_reduction <add>, %17, %cst_11 [1] : vector<16x16xf32> to vector<16xf32>
    %20 = vector.shape_cast %19 : vector<16xf32> to vector<16x1xf32>
    %21 = tpu.reciprocal %20 {approx = true} : vector<16x1xf32> -> vector<16x1xf32>
    %22 = vector.broadcast %21 : vector<16x1xf32> to vector<16x8xf32>
    %23 = arith.mulf %18, %22 : vector<16x8xf32>
    %24 = vector.extract_strided_slice %8 {offsets = [0, 0], sizes = [8, 32], strides = [1, 1]} : vector<32x32xf32> to vector<8x32xf32>
    %cst_12 = arith.constant dense<0.000000e+00> : vector<16x32xf32>
    %25 = tpu.matmul %23, %24, %cst_12 {dimension_numbers = #tpu.dot_dimension_numbers<[1], [0], [0], [1], [0, 0, 1, 1], [], []>} : vector<16x8xf32>, vector<8x32xf32>, vector<16x32xf32> -> vector<16x32xf32>
    %26 = vector.extract_strided_slice %7 {offsets = [0, 8], sizes = [16, 8], strides = [1, 1]} : vector<16x96xf32> to vector<16x8xf32>
    %27 = vector.extract_strided_slice %7 {offsets = [0, 40], sizes = [16, 8], strides = [1, 1]} : vector<16x96xf32> to vector<16x8xf32>
    %28 = vector.extract_strided_slice %7 {offsets = [0, 72], sizes = [16, 8], strides = [1, 1]} : vector<16x96xf32> to vector<16x8xf32>
    %cst_13 = arith.constant dense<0.000000e+00> : vector<16x16xf32>
    %29 = tpu.matmul %26, %27, %cst_13 {dimension_numbers = #tpu.dot_dimension_numbers<[1], [1], [0], [0], [0, 0, 1, 0], [], []>} : vector<16x8xf32>, vector<16x8xf32>, vector<16x16xf32> -> vector<16x16xf32>
    %cst_14 = arith.constant -5.000000e+00 : f32
    %cst_15 = arith.constant 5.000000e+00 : f32
    %30 = vector.broadcast %cst_14 : f32 to vector<16x16xf32>
    %31 = arith.maximumf %30, %29 : vector<16x16xf32>
    %32 = vector.broadcast %cst_15 : f32 to vector<16x16xf32>
    %33 = arith.minimumf %32, %31 : vector<16x16xf32>
    %34 = math.exp %33 : vector<16x16xf32>
    %cst_16 = arith.constant dense<0.000000e+00> : vector<16x8xf32>
    %35 = tpu.matmul %34, %28, %cst_16 {dimension_numbers = #tpu.dot_dimension_numbers<[1], [0], [0], [1], [0, 0, 1, 1], [], []>} : vector<16x16xf32>, vector<16x8xf32>, vector<16x8xf32> -> vector<16x8xf32>
    %cst_17 = arith.constant dense<0.000000e+00> : vector<16xf32>
    %36 = vector.multi_reduction <add>, %34, %cst_17 [1] : vector<16x16xf32> to vector<16xf32>
    %37 = vector.shape_cast %36 : vector<16xf32> to vector<16x1xf32>
    %38 = tpu.reciprocal %37 {approx = true} : vector<16x1xf32> -> vector<16x1xf32>
    %39 = vector.broadcast %38 : vector<16x1xf32> to vector<16x8xf32>
    %40 = arith.mulf %35, %39 : vector<16x8xf32>
    %41 = vector.extract_strided_slice %8 {offsets = [8, 0], sizes = [8, 32], strides = [1, 1]} : vector<32x32xf32> to vector<8x32xf32>
    %cst_18 = arith.constant dense<0.000000e+00> : vector<16x32xf32>
    %42 = tpu.matmul %40, %41, %cst_18 {dimension_numbers = #tpu.dot_dimension_numbers<[1], [0], [0], [1], [0, 0, 1, 1], [], []>} : vector<16x8xf32>, vector<8x32xf32>, vector<16x32xf32> -> vector<16x32xf32>
    %43 = arith.addf %25, %42 : vector<16x32xf32>
    %44 = vector.extract_strided_slice %7 {offsets = [0, 16], sizes = [16, 8], strides = [1, 1]} : vector<16x96xf32> to vector<16x8xf32>
    %45 = vector.extract_strided_slice %7 {offsets = [0, 48], sizes = [16, 8], strides = [1, 1]} : vector<16x96xf32> to vector<16x8xf32>
    %46 = vector.extract_strided_slice %7 {offsets = [0, 80], sizes = [16, 8], strides = [1, 1]} : vector<16x96xf32> to vector<16x8xf32>
    %cst_19 = arith.constant dense<0.000000e+00> : vector<16x16xf32>
    %47 = tpu.matmul %44, %45, %cst_19 {dimension_numbers = #tpu.dot_dimension_numbers<[1], [1], [0], [0], [0, 0, 1, 0], [], []>} : vector<16x8xf32>, vector<16x8xf32>, vector<16x16xf32> -> vector<16x16xf32>
    %cst_20 = arith.constant -5.000000e+00 : f32
    %cst_21 = arith.constant 5.000000e+00 : f32
    %48 = vector.broadcast %cst_20 : f32 to vector<16x16xf32>
    %49 = arith.maximumf %48, %47 : vector<16x16xf32>
    %50 = vector.broadcast %cst_21 : f32 to vector<16x16xf32>
    %51 = arith.minimumf %50, %49 : vector<16x16xf32>
    %52 = math.exp %51 : vector<16x16xf32>
    %cst_22 = arith.constant dense<0.000000e+00> : vector<16x8xf32>
    %53 = tpu.matmul %52, %46, %cst_22 {dimension_numbers = #tpu.dot_dimension_numbers<[1], [0], [0], [1], [0, 0, 1, 1], [], []>} : vector<16x16xf32>, vector<16x8xf32>, vector<16x8xf32> -> vector<16x8xf32>
    %cst_23 = arith.constant dense<0.000000e+00> : vector<16xf32>
    %54 = vector.multi_reduction <add>, %52, %cst_23 [1] : vector<16x16xf32> to vector<16xf32>
    %55 = vector.shape_cast %54 : vector<16xf32> to vector<16x1xf32>
    %56 = tpu.reciprocal %55 {approx = true} : vector<16x1xf32> -> vector<16x1xf32>
    %57 = vector.broadcast %56 : vector<16x1xf32> to vector<16x8xf32>
    %58 = arith.mulf %53, %57 : vector<16x8xf32>
    %59 = vector.extract_strided_slice %8 {offsets = [16, 0], sizes = [8, 32], strides = [1, 1]} : vector<32x32xf32> to vector<8x32xf32>
    %cst_24 = arith.constant dense<0.000000e+00> : vector<16x32xf32>
    %60 = tpu.matmul %58, %59, %cst_24 {dimension_numbers = #tpu.dot_dimension_numbers<[1], [0], [0], [1], [0, 0, 1, 1], [], []>} : vector<16x8xf32>, vector<8x32xf32>, vector<16x32xf32> -> vector<16x32xf32>
    %61 = arith.addf %43, %60 : vector<16x32xf32>
    %62 = vector.extract_strided_slice %7 {offsets = [0, 24], sizes = [16, 8], strides = [1, 1]} : vector<16x96xf32> to vector<16x8xf32>
    %63 = vector.extract_strided_slice %7 {offsets = [0, 56], sizes = [16, 8], strides = [1, 1]} : vector<16x96xf32> to vector<16x8xf32>
    %64 = vector.extract_strided_slice %7 {offsets = [0, 88], sizes = [16, 8], strides = [1, 1]} : vector<16x96xf32> to vector<16x8xf32>
    %cst_25 = arith.constant dense<0.000000e+00> : vector<16x16xf32>
    %65 = tpu.matmul %62, %63, %cst_25 {dimension_numbers = #tpu.dot_dimension_numbers<[1], [1], [0], [0], [0, 0, 1, 0], [], []>} : vector<16x8xf32>, vector<16x8xf32>, vector<16x16xf32> -> vector<16x16xf32>
    %cst_26 = arith.constant -5.000000e+00 : f32
    %cst_27 = arith.constant 5.000000e+00 : f32
    %66 = vector.broadcast %cst_26 : f32 to vector<16x16xf32>
    %67 = arith.maximumf %66, %65 : vector<16x16xf32>
    %68 = vector.broadcast %cst_27 : f32 to vector<16x16xf32>
    %69 = arith.minimumf %68, %67 : vector<16x16xf32>
    %70 = math.exp %69 : vector<16x16xf32>
    %cst_28 = arith.constant dense<0.000000e+00> : vector<16x8xf32>
    %71 = tpu.matmul %70, %64, %cst_28 {dimension_numbers = #tpu.dot_dimension_numbers<[1], [0], [0], [1], [0, 0, 1, 1], [], []>} : vector<16x16xf32>, vector<16x8xf32>, vector<16x8xf32> -> vector<16x8xf32>
    %cst_29 = arith.constant dense<0.000000e+00> : vector<16xf32>
    %72 = vector.multi_reduction <add>, %70, %cst_29 [1] : vector<16x16xf32> to vector<16xf32>
    %73 = vector.shape_cast %72 : vector<16xf32> to vector<16x1xf32>
    %74 = tpu.reciprocal %73 {approx = true} : vector<16x1xf32> -> vector<16x1xf32>
    %75 = vector.broadcast %74 : vector<16x1xf32> to vector<16x8xf32>
    %76 = arith.mulf %71, %75 : vector<16x8xf32>
    %77 = vector.extract_strided_slice %8 {offsets = [24, 0], sizes = [8, 32], strides = [1, 1]} : vector<32x32xf32> to vector<8x32xf32>
    %cst_30 = arith.constant dense<0.000000e+00> : vector<16x32xf32>
    %78 = tpu.matmul %76, %77, %cst_30 {dimension_numbers = #tpu.dot_dimension_numbers<[1], [0], [0], [1], [0, 0, 1, 1], [], []>} : vector<16x8xf32>, vector<8x32xf32>, vector<16x32xf32> -> vector<16x32xf32>
    %79 = arith.addf %61, %78 : vector<16x32xf32>
    %c80 = arith.constant 80 : index
    %c0_31 = arith.constant 0 : index
    %80 = vector.load %arg1[%c80, %c0_31] : memref<888x128xf32, #tpu.memory_space<vmem>>, vector<1x32xf32>
    %81 = vector.broadcast %80 : vector<1x32xf32> to vector<16x32xf32>
    %82 = arith.addf %79, %81 : vector<16x32xf32>
    %83 = arith.addf %82, %5 : vector<16x32xf32>
    %c88 = arith.constant 88 : index
    %c0_32 = arith.constant 0 : index
    %84 = vector.load %arg1[%c88, %c0_32] : memref<888x128xf32, #tpu.memory_space<vmem>>, vector<1x32xf32>
    %c96 = arith.constant 96 : index
    %c0_33 = arith.constant 0 : index
    %85 = vector.load %arg1[%c96, %c0_33] : memref<888x128xf32, #tpu.memory_space<vmem>>, vector<1x32xf32>
    %cst_34 = arith.constant dense<0.000000e+00> : vector<16xf32>
    %86 = vector.multi_reduction <add>, %83, %cst_34 [1] : vector<16x32xf32> to vector<16xf32>
    %87 = vector.shape_cast %86 : vector<16xf32> to vector<16x1xf32>
    %cst_35 = arith.constant 3.200000e+01 : f32
    %88 = vector.broadcast %cst_35 : f32 to vector<16x1xf32>
    %89 = arith.divf %87, %88 : vector<16x1xf32>
    %90 = arith.mulf %83, %83 : vector<16x32xf32>
    %cst_36 = arith.constant dense<0.000000e+00> : vector<16xf32>
    %91 = vector.multi_reduction <add>, %90, %cst_36 [1] : vector<16x32xf32> to vector<16xf32>
    %92 = vector.shape_cast %91 : vector<16xf32> to vector<16x1xf32>
    %cst_37 = arith.constant 3.200000e+01 : f32
    %93 = vector.broadcast %cst_37 : f32 to vector<16x1xf32>
    %94 = arith.divf %92, %93 : vector<16x1xf32>
    %95 = arith.mulf %89, %89 : vector<16x1xf32>
    %96 = arith.subf %94, %95 : vector<16x1xf32>
    %97 = vector.broadcast %89 : vector<16x1xf32> to vector<16x32xf32>
    %98 = arith.subf %83, %97 : vector<16x32xf32>
    %cst_38 = arith.constant 9.99999974E-6 : f32
    %99 = vector.broadcast %cst_38 : f32 to vector<16x1xf32>
    %100 = arith.addf %96, %99 : vector<16x1xf32>
    %101 = math.rsqrt %100 : vector<16x1xf32>
    %102 = vector.broadcast %101 : vector<16x1xf32> to vector<16x32xf32>
    %103 = arith.mulf %98, %102 : vector<16x32xf32>
    %104 = vector.broadcast %84 : vector<1x32xf32> to vector<16x32xf32>
    %105 = arith.mulf %103, %104 : vector<16x32xf32>
    %106 = vector.broadcast %85 : vector<1x32xf32> to vector<16x32xf32>
    %107 = arith.addf %105, %106 : vector<16x32xf32>
    %c104 = arith.constant 104 : index
    %c0_39 = arith.constant 0 : index
    %108 = vector.load %arg1[%c104, %c0_39] : memref<888x128xf32, #tpu.memory_space<vmem>>, vector<32x128xf32>
    %cst_40 = arith.constant dense<0.000000e+00> : vector<16x128xf32>
    %109 = tpu.matmul %107, %108, %cst_40 {dimension_numbers = #tpu.dot_dimension_numbers<[1], [0], [0], [1], [0, 0, 1, 1], [], []>} : vector<16x32xf32>, vector<32x128xf32>, vector<16x128xf32> -> vector<16x128xf32>
    %c136 = arith.constant 136 : index
    %c0_41 = arith.constant 0 : index
    %110 = vector.load %arg1[%c136, %c0_41] : memref<888x128xf32, #tpu.memory_space<vmem>>, vector<1x128xf32>
    %111 = vector.broadcast %110 : vector<1x128xf32> to vector<16x128xf32>
    %112 = arith.addf %109, %111 : vector<16x128xf32>
    %cst_42 = arith.constant 0.000000e+00 : f32
    %113 = vector.broadcast %cst_42 : f32 to vector<16x128xf32>
    %114 = arith.maximumf %112, %113 : vector<16x128xf32>
    %c144 = arith.constant 144 : index
    %c0_43 = arith.constant 0 : index
    %115 = vector.load %arg1[%c144, %c0_43] : memref<888x128xf32, #tpu.memory_space<vmem>>, vector<128x32xf32>
    %cst_44 = arith.constant dense<0.000000e+00> : vector<16x32xf32>
    %116 = tpu.matmul %114, %115, %cst_44 {dimension_numbers = #tpu.dot_dimension_numbers<[1], [0], [0], [1], [0, 0, 1, 1], [], []>} : vector<16x128xf32>, vector<128x32xf32>, vector<16x32xf32> -> vector<16x32xf32>
    %c272 = arith.constant 272 : index
    %c0_45 = arith.constant 0 : index
    %117 = vector.load %arg1[%c272, %c0_45] : memref<888x128xf32, #tpu.memory_space<vmem>>, vector<1x32xf32>
    %118 = vector.broadcast %117 : vector<1x32xf32> to vector<16x32xf32>
    %119 = arith.addf %116, %118 : vector<16x32xf32>
    %120 = arith.addf %119, %107 : vector<16x32xf32>
    %c280 = arith.constant 280 : index
    %c0_46 = arith.constant 0 : index
    %121 = vector.load %arg1[%c280, %c0_46] : memref<888x128xf32, #tpu.memory_space<vmem>>, vector<1x32xf32>
    %c288 = arith.constant 288 : index
    %c0_47 = arith.constant 0 : index
    %122 = vector.load %arg1[%c288, %c0_47] : memref<888x128xf32, #tpu.memory_space<vmem>>, vector<1x32xf32>
    %cst_48 = arith.constant dense<0.000000e+00> : vector<16xf32>
    %123 = vector.multi_reduction <add>, %120, %cst_48 [1] : vector<16x32xf32> to vector<16xf32>
    %124 = vector.shape_cast %123 : vector<16xf32> to vector<16x1xf32>
    %cst_49 = arith.constant 3.200000e+01 : f32
    %125 = vector.broadcast %cst_49 : f32 to vector<16x1xf32>
    %126 = arith.divf %124, %125 : vector<16x1xf32>
    %127 = arith.mulf %120, %120 : vector<16x32xf32>
    %cst_50 = arith.constant dense<0.000000e+00> : vector<16xf32>
    %128 = vector.multi_reduction <add>, %127, %cst_50 [1] : vector<16x32xf32> to vector<16xf32>
    %129 = vector.shape_cast %128 : vector<16xf32> to vector<16x1xf32>
    %cst_51 = arith.constant 3.200000e+01 : f32
    %130 = vector.broadcast %cst_51 : f32 to vector<16x1xf32>
    %131 = arith.divf %129, %130 : vector<16x1xf32>
    %132 = arith.mulf %126, %126 : vector<16x1xf32>
    %133 = arith.subf %131, %132 : vector<16x1xf32>
    %134 = vector.broadcast %126 : vector<16x1xf32> to vector<16x32xf32>
    %135 = arith.subf %120, %134 : vector<16x32xf32>
    %cst_52 = arith.constant 9.99999974E-6 : f32
    %136 = vector.broadcast %cst_52 : f32 to vector<16x1xf32>
    %137 = arith.addf %133, %136 : vector<16x1xf32>
    %138 = math.rsqrt %137 : vector<16x1xf32>
    %139 = vector.broadcast %138 : vector<16x1xf32> to vector<16x32xf32>
    %140 = arith.mulf %135, %139 : vector<16x32xf32>
    %141 = vector.broadcast %121 : vector<1x32xf32> to vector<16x32xf32>
    %142 = arith.mulf %140, %141 : vector<16x32xf32>
    %143 = vector.broadcast %122 : vector<1x32xf32> to vector<16x32xf32>
    %144 = arith.addf %142, %143 : vector<16x32xf32>
    %c296 = arith.constant 296 : index
    %c0_53 = arith.constant 0 : index
    %145 = vector.load %arg1[%c296, %c0_53] : memref<888x128xf32, #tpu.memory_space<vmem>>, vector<32x96xf32>
    %cst_54 = arith.constant dense<0.000000e+00> : vector<16x96xf32>
    %146 = tpu.matmul %144, %145, %cst_54 {dimension_numbers = #tpu.dot_dimension_numbers<[1], [0], [0], [1], [0, 0, 1, 1], [], []>} : vector<16x32xf32>, vector<32x96xf32>, vector<16x96xf32> -> vector<16x96xf32>
    %c328 = arith.constant 328 : index
    %c0_55 = arith.constant 0 : index
    %147 = vector.load %arg1[%c328, %c0_55] : memref<888x128xf32, #tpu.memory_space<vmem>>, vector<32x32xf32>
    %148 = vector.extract_strided_slice %146 {offsets = [0, 0], sizes = [16, 8], strides = [1, 1]} : vector<16x96xf32> to vector<16x8xf32>
    %149 = vector.extract_strided_slice %146 {offsets = [0, 32], sizes = [16, 8], strides = [1, 1]} : vector<16x96xf32> to vector<16x8xf32>
    %150 = vector.extract_strided_slice %146 {offsets = [0, 64], sizes = [16, 8], strides = [1, 1]} : vector<16x96xf32> to vector<16x8xf32>
    %cst_56 = arith.constant dense<0.000000e+00> : vector<16x16xf32>
    %151 = tpu.matmul %148, %149, %cst_56 {dimension_numbers = #tpu.dot_dimension_numbers<[1], [1], [0], [0], [0, 0, 1, 0], [], []>} : vector<16x8xf32>, vector<16x8xf32>, vector<16x16xf32> -> vector<16x16xf32>
    %cst_57 = arith.constant -5.000000e+00 : f32
    %cst_58 = arith.constant 5.000000e+00 : f32
    %152 = vector.broadcast %cst_57 : f32 to vector<16x16xf32>
    %153 = arith.maximumf %152, %151 : vector<16x16xf32>
    %154 = vector.broadcast %cst_58 : f32 to vector<16x16xf32>
    %155 = arith.minimumf %154, %153 : vector<16x16xf32>
    %156 = math.exp %155 : vector<16x16xf32>
    %cst_59 = arith.constant dense<0.000000e+00> : vector<16x8xf32>
    %157 = tpu.matmul %156, %150, %cst_59 {dimension_numbers = #tpu.dot_dimension_numbers<[1], [0], [0], [1], [0, 0, 1, 1], [], []>} : vector<16x16xf32>, vector<16x8xf32>, vector<16x8xf32> -> vector<16x8xf32>
    %cst_60 = arith.constant dense<0.000000e+00> : vector<16xf32>
    %158 = vector.multi_reduction <add>, %156, %cst_60 [1] : vector<16x16xf32> to vector<16xf32>
    %159 = vector.shape_cast %158 : vector<16xf32> to vector<16x1xf32>
    %160 = tpu.reciprocal %159 {approx = true} : vector<16x1xf32> -> vector<16x1xf32>
    %161 = vector.broadcast %160 : vector<16x1xf32> to vector<16x8xf32>
    %162 = arith.mulf %157, %161 : vector<16x8xf32>
    %163 = vector.extract_strided_slice %147 {offsets = [0, 0], sizes = [8, 32], strides = [1, 1]} : vector<32x32xf32> to vector<8x32xf32>
    %cst_61 = arith.constant dense<0.000000e+00> : vector<16x32xf32>
    %164 = tpu.matmul %162, %163, %cst_61 {dimension_numbers = #tpu.dot_dimension_numbers<[1], [0], [0], [1], [0, 0, 1, 1], [], []>} : vector<16x8xf32>, vector<8x32xf32>, vector<16x32xf32> -> vector<16x32xf32>
    %165 = vector.extract_strided_slice %146 {offsets = [0, 8], sizes = [16, 8], strides = [1, 1]} : vector<16x96xf32> to vector<16x8xf32>
    %166 = vector.extract_strided_slice %146 {offsets = [0, 40], sizes = [16, 8], strides = [1, 1]} : vector<16x96xf32> to vector<16x8xf32>
    %167 = vector.extract_strided_slice %146 {offsets = [0, 72], sizes = [16, 8], strides = [1, 1]} : vector<16x96xf32> to vector<16x8xf32>
    %cst_62 = arith.constant dense<0.000000e+00> : vector<16x16xf32>
    %168 = tpu.matmul %165, %166, %cst_62 {dimension_numbers = #tpu.dot_dimension_numbers<[1], [1], [0], [0], [0, 0, 1, 0], [], []>} : vector<16x8xf32>, vector<16x8xf32>, vector<16x16xf32> -> vector<16x16xf32>
    %cst_63 = arith.constant -5.000000e+00 : f32
    %cst_64 = arith.constant 5.000000e+00 : f32
    %169 = vector.broadcast %cst_63 : f32 to vector<16x16xf32>
    %170 = arith.maximumf %169, %168 : vector<16x16xf32>
    %171 = vector.broadcast %cst_64 : f32 to vector<16x16xf32>
    %172 = arith.minimumf %171, %170 : vector<16x16xf32>
    %173 = math.exp %172 : vector<16x16xf32>
    %cst_65 = arith.constant dense<0.000000e+00> : vector<16x8xf32>
    %174 = tpu.matmul %173, %167, %cst_65 {dimension_numbers = #tpu.dot_dimension_numbers<[1], [0], [0], [1], [0, 0, 1, 1], [], []>} : vector<16x16xf32>, vector<16x8xf32>, vector<16x8xf32> -> vector<16x8xf32>
    %cst_66 = arith.constant dense<0.000000e+00> : vector<16xf32>
    %175 = vector.multi_reduction <add>, %173, %cst_66 [1] : vector<16x16xf32> to vector<16xf32>
    %176 = vector.shape_cast %175 : vector<16xf32> to vector<16x1xf32>
    %177 = tpu.reciprocal %176 {approx = true} : vector<16x1xf32> -> vector<16x1xf32>
    %178 = vector.broadcast %177 : vector<16x1xf32> to vector<16x8xf32>
    %179 = arith.mulf %174, %178 : vector<16x8xf32>
    %180 = vector.extract_strided_slice %147 {offsets = [8, 0], sizes = [8, 32], strides = [1, 1]} : vector<32x32xf32> to vector<8x32xf32>
    %cst_67 = arith.constant dense<0.000000e+00> : vector<16x32xf32>
    %181 = tpu.matmul %179, %180, %cst_67 {dimension_numbers = #tpu.dot_dimension_numbers<[1], [0], [0], [1], [0, 0, 1, 1], [], []>} : vector<16x8xf32>, vector<8x32xf32>, vector<16x32xf32> -> vector<16x32xf32>
    %182 = arith.addf %164, %181 : vector<16x32xf32>
    %183 = vector.extract_strided_slice %146 {offsets = [0, 16], sizes = [16, 8], strides = [1, 1]} : vector<16x96xf32> to vector<16x8xf32>
    %184 = vector.extract_strided_slice %146 {offsets = [0, 48], sizes = [16, 8], strides = [1, 1]} : vector<16x96xf32> to vector<16x8xf32>
    %185 = vector.extract_strided_slice %146 {offsets = [0, 80], sizes = [16, 8], strides = [1, 1]} : vector<16x96xf32> to vector<16x8xf32>
    %cst_68 = arith.constant dense<0.000000e+00> : vector<16x16xf32>
    %186 = tpu.matmul %183, %184, %cst_68 {dimension_numbers = #tpu.dot_dimension_numbers<[1], [1], [0], [0], [0, 0, 1, 0], [], []>} : vector<16x8xf32>, vector<16x8xf32>, vector<16x16xf32> -> vector<16x16xf32>
    %cst_69 = arith.constant -5.000000e+00 : f32
    %cst_70 = arith.constant 5.000000e+00 : f32
    %187 = vector.broadcast %cst_69 : f32 to vector<16x16xf32>
    %188 = arith.maximumf %187, %186 : vector<16x16xf32>
    %189 = vector.broadcast %cst_70 : f32 to vector<16x16xf32>
    %190 = arith.minimumf %189, %188 : vector<16x16xf32>
    %191 = math.exp %190 : vector<16x16xf32>
    %cst_71 = arith.constant dense<0.000000e+00> : vector<16x8xf32>
    %192 = tpu.matmul %191, %185, %cst_71 {dimension_numbers = #tpu.dot_dimension_numbers<[1], [0], [0], [1], [0, 0, 1, 1], [], []>} : vector<16x16xf32>, vector<16x8xf32>, vector<16x8xf32> -> vector<16x8xf32>
    %cst_72 = arith.constant dense<0.000000e+00> : vector<16xf32>
    %193 = vector.multi_reduction <add>, %191, %cst_72 [1] : vector<16x16xf32> to vector<16xf32>
    %194 = vector.shape_cast %193 : vector<16xf32> to vector<16x1xf32>
    %195 = tpu.reciprocal %194 {approx = true} : vector<16x1xf32> -> vector<16x1xf32>
    %196 = vector.broadcast %195 : vector<16x1xf32> to vector<16x8xf32>
    %197 = arith.mulf %192, %196 : vector<16x8xf32>
    %198 = vector.extract_strided_slice %147 {offsets = [16, 0], sizes = [8, 32], strides = [1, 1]} : vector<32x32xf32> to vector<8x32xf32>
    %cst_73 = arith.constant dense<0.000000e+00> : vector<16x32xf32>
    %199 = tpu.matmul %197, %198, %cst_73 {dimension_numbers = #tpu.dot_dimension_numbers<[1], [0], [0], [1], [0, 0, 1, 1], [], []>} : vector<16x8xf32>, vector<8x32xf32>, vector<16x32xf32> -> vector<16x32xf32>
    %200 = arith.addf %182, %199 : vector<16x32xf32>
    %201 = vector.extract_strided_slice %146 {offsets = [0, 24], sizes = [16, 8], strides = [1, 1]} : vector<16x96xf32> to vector<16x8xf32>
    %202 = vector.extract_strided_slice %146 {offsets = [0, 56], sizes = [16, 8], strides = [1, 1]} : vector<16x96xf32> to vector<16x8xf32>
    %203 = vector.extract_strided_slice %146 {offsets = [0, 88], sizes = [16, 8], strides = [1, 1]} : vector<16x96xf32> to vector<16x8xf32>
    %cst_74 = arith.constant dense<0.000000e+00> : vector<16x16xf32>
    %204 = tpu.matmul %201, %202, %cst_74 {dimension_numbers = #tpu.dot_dimension_numbers<[1], [1], [0], [0], [0, 0, 1, 0], [], []>} : vector<16x8xf32>, vector<16x8xf32>, vector<16x16xf32> -> vector<16x16xf32>
    %cst_75 = arith.constant -5.000000e+00 : f32
    %cst_76 = arith.constant 5.000000e+00 : f32
    %205 = vector.broadcast %cst_75 : f32 to vector<16x16xf32>
    %206 = arith.maximumf %205, %204 : vector<16x16xf32>
    %207 = vector.broadcast %cst_76 : f32 to vector<16x16xf32>
    %208 = arith.minimumf %207, %206 : vector<16x16xf32>
    %209 = math.exp %208 : vector<16x16xf32>
    %cst_77 = arith.constant dense<0.000000e+00> : vector<16x8xf32>
    %210 = tpu.matmul %209, %203, %cst_77 {dimension_numbers = #tpu.dot_dimension_numbers<[1], [0], [0], [1], [0, 0, 1, 1], [], []>} : vector<16x16xf32>, vector<16x8xf32>, vector<16x8xf32> -> vector<16x8xf32>
    %cst_78 = arith.constant dense<0.000000e+00> : vector<16xf32>
    %211 = vector.multi_reduction <add>, %209, %cst_78 [1] : vector<16x16xf32> to vector<16xf32>
    %212 = vector.shape_cast %211 : vector<16xf32> to vector<16x1xf32>
    %213 = tpu.reciprocal %212 {approx = true} : vector<16x1xf32> -> vector<16x1xf32>
    %214 = vector.broadcast %213 : vector<16x1xf32> to vector<16x8xf32>
    %215 = arith.mulf %210, %214 : vector<16x8xf32>
    %216 = vector.extract_strided_slice %147 {offsets = [24, 0], sizes = [8, 32], strides = [1, 1]} : vector<32x32xf32> to vector<8x32xf32>
    %cst_79 = arith.constant dense<0.000000e+00> : vector<16x32xf32>
    %217 = tpu.matmul %215, %216, %cst_79 {dimension_numbers = #tpu.dot_dimension_numbers<[1], [0], [0], [1], [0, 0, 1, 1], [], []>} : vector<16x8xf32>, vector<8x32xf32>, vector<16x32xf32> -> vector<16x32xf32>
    %218 = arith.addf %200, %217 : vector<16x32xf32>
    %c360 = arith.constant 360 : index
    %c0_80 = arith.constant 0 : index
    %219 = vector.load %arg1[%c360, %c0_80] : memref<888x128xf32, #tpu.memory_space<vmem>>, vector<1x32xf32>
    %220 = vector.broadcast %219 : vector<1x32xf32> to vector<16x32xf32>
    %221 = arith.addf %218, %220 : vector<16x32xf32>
    %222 = arith.addf %221, %144 : vector<16x32xf32>
    %c368 = arith.constant 368 : index
    %c0_81 = arith.constant 0 : index
    %223 = vector.load %arg1[%c368, %c0_81] : memref<888x128xf32, #tpu.memory_space<vmem>>, vector<1x32xf32>
    %c376 = arith.constant 376 : index
    %c0_82 = arith.constant 0 : index
    %224 = vector.load %arg1[%c376, %c0_82] : memref<888x128xf32, #tpu.memory_space<vmem>>, vector<1x32xf32>
    %cst_83 = arith.constant dense<0.000000e+00> : vector<16xf32>
    %225 = vector.multi_reduction <add>, %222, %cst_83 [1] : vector<16x32xf32> to vector<16xf32>
    %226 = vector.shape_cast %225 : vector<16xf32> to vector<16x1xf32>
    %cst_84 = arith.constant 3.200000e+01 : f32
    %227 = vector.broadcast %cst_84 : f32 to vector<16x1xf32>
    %228 = arith.divf %226, %227 : vector<16x1xf32>
    %229 = arith.mulf %222, %222 : vector<16x32xf32>
    %cst_85 = arith.constant dense<0.000000e+00> : vector<16xf32>
    %230 = vector.multi_reduction <add>, %229, %cst_85 [1] : vector<16x32xf32> to vector<16xf32>
    %231 = vector.shape_cast %230 : vector<16xf32> to vector<16x1xf32>
    %cst_86 = arith.constant 3.200000e+01 : f32
    %232 = vector.broadcast %cst_86 : f32 to vector<16x1xf32>
    %233 = arith.divf %231, %232 : vector<16x1xf32>
    %234 = arith.mulf %228, %228 : vector<16x1xf32>
    %235 = arith.subf %233, %234 : vector<16x1xf32>
    %236 = vector.broadcast %228 : vector<16x1xf32> to vector<16x32xf32>
    %237 = arith.subf %222, %236 : vector<16x32xf32>
    %cst_87 = arith.constant 9.99999974E-6 : f32
    %238 = vector.broadcast %cst_87 : f32 to vector<16x1xf32>
    %239 = arith.addf %235, %238 : vector<16x1xf32>
    %240 = math.rsqrt %239 : vector<16x1xf32>
    %241 = vector.broadcast %240 : vector<16x1xf32> to vector<16x32xf32>
    %242 = arith.mulf %237, %241 : vector<16x32xf32>
    %243 = vector.broadcast %223 : vector<1x32xf32> to vector<16x32xf32>
    %244 = arith.mulf %242, %243 : vector<16x32xf32>
    %245 = vector.broadcast %224 : vector<1x32xf32> to vector<16x32xf32>
    %246 = arith.addf %244, %245 : vector<16x32xf32>
    %c384 = arith.constant 384 : index
    %c0_88 = arith.constant 0 : index
    %247 = vector.load %arg1[%c384, %c0_88] : memref<888x128xf32, #tpu.memory_space<vmem>>, vector<32x128xf32>
    %cst_89 = arith.constant dense<0.000000e+00> : vector<16x128xf32>
    %248 = tpu.matmul %246, %247, %cst_89 {dimension_numbers = #tpu.dot_dimension_numbers<[1], [0], [0], [1], [0, 0, 1, 1], [], []>} : vector<16x32xf32>, vector<32x128xf32>, vector<16x128xf32> -> vector<16x128xf32>
    %c416 = arith.constant 416 : index
    %c0_90 = arith.constant 0 : index
    %249 = vector.load %arg1[%c416, %c0_90] : memref<888x128xf32, #tpu.memory_space<vmem>>, vector<1x128xf32>
    %250 = vector.broadcast %249 : vector<1x128xf32> to vector<16x128xf32>
    %251 = arith.addf %248, %250 : vector<16x128xf32>
    %cst_91 = arith.constant 0.000000e+00 : f32
    %252 = vector.broadcast %cst_91 : f32 to vector<16x128xf32>
    %253 = arith.maximumf %251, %252 : vector<16x128xf32>
    %c424 = arith.constant 424 : index
    %c0_92 = arith.constant 0 : index
    %254 = vector.load %arg1[%c424, %c0_92] : memref<888x128xf32, #tpu.memory_space<vmem>>, vector<128x32xf32>
    %cst_93 = arith.constant dense<0.000000e+00> : vector<16x32xf32>
    %255 = tpu.matmul %253, %254, %cst_93 {dimension_numbers = #tpu.dot_dimension_numbers<[1], [0], [0], [1], [0, 0, 1, 1], [], []>} : vector<16x128xf32>, vector<128x32xf32>, vector<16x32xf32> -> vector<16x32xf32>
    %c552 = arith.constant 552 : index
    %c0_94 = arith.constant 0 : index
    %256 = vector.load %arg1[%c552, %c0_94] : memref<888x128xf32, #tpu.memory_space<vmem>>, vector<1x32xf32>
    %257 = vector.broadcast %256 : vector<1x32xf32> to vector<16x32xf32>
    %258 = arith.addf %255, %257 : vector<16x32xf32>
    %259 = arith.addf %258, %246 : vector<16x32xf32>
    %c560 = arith.constant 560 : index
    %c0_95 = arith.constant 0 : index
    %260 = vector.load %arg1[%c560, %c0_95] : memref<888x128xf32, #tpu.memory_space<vmem>>, vector<1x32xf32>
    %c568 = arith.constant 568 : index
    %c0_96 = arith.constant 0 : index
    %261 = vector.load %arg1[%c568, %c0_96] : memref<888x128xf32, #tpu.memory_space<vmem>>, vector<1x32xf32>
    %cst_97 = arith.constant dense<0.000000e+00> : vector<16xf32>
    %262 = vector.multi_reduction <add>, %259, %cst_97 [1] : vector<16x32xf32> to vector<16xf32>
    %263 = vector.shape_cast %262 : vector<16xf32> to vector<16x1xf32>
    %cst_98 = arith.constant 3.200000e+01 : f32
    %264 = vector.broadcast %cst_98 : f32 to vector<16x1xf32>
    %265 = arith.divf %263, %264 : vector<16x1xf32>
    %266 = arith.mulf %259, %259 : vector<16x32xf32>
    %cst_99 = arith.constant dense<0.000000e+00> : vector<16xf32>
    %267 = vector.multi_reduction <add>, %266, %cst_99 [1] : vector<16x32xf32> to vector<16xf32>
    %268 = vector.shape_cast %267 : vector<16xf32> to vector<16x1xf32>
    %cst_100 = arith.constant 3.200000e+01 : f32
    %269 = vector.broadcast %cst_100 : f32 to vector<16x1xf32>
    %270 = arith.divf %268, %269 : vector<16x1xf32>
    %271 = arith.mulf %265, %265 : vector<16x1xf32>
    %272 = arith.subf %270, %271 : vector<16x1xf32>
    %273 = vector.broadcast %265 : vector<16x1xf32> to vector<16x32xf32>
    %274 = arith.subf %259, %273 : vector<16x32xf32>
    %cst_101 = arith.constant 9.99999974E-6 : f32
    %275 = vector.broadcast %cst_101 : f32 to vector<16x1xf32>
    %276 = arith.addf %272, %275 : vector<16x1xf32>
    %277 = math.rsqrt %276 : vector<16x1xf32>
    %278 = vector.broadcast %277 : vector<16x1xf32> to vector<16x32xf32>
    %279 = arith.mulf %274, %278 : vector<16x32xf32>
    %280 = vector.broadcast %260 : vector<1x32xf32> to vector<16x32xf32>
    %281 = arith.mulf %279, %280 : vector<16x32xf32>
    %282 = vector.broadcast %261 : vector<1x32xf32> to vector<16x32xf32>
    %283 = arith.addf %281, %282 : vector<16x32xf32>
    %c576 = arith.constant 576 : index
    %c0_102 = arith.constant 0 : index
    %284 = vector.load %arg1[%c576, %c0_102] : memref<888x128xf32, #tpu.memory_space<vmem>>, vector<32x128xf32>
    %cst_103 = arith.constant dense<0.000000e+00> : vector<16x128xf32>
    %285 = tpu.matmul %283, %284, %cst_103 {dimension_numbers = #tpu.dot_dimension_numbers<[1], [0], [0], [1], [0, 0, 1, 1], [], []>} : vector<16x32xf32>, vector<32x128xf32>, vector<16x128xf32> -> vector<16x128xf32>
    %c608 = arith.constant 608 : index
    %c0_104 = arith.constant 0 : index
    %286 = vector.load %arg1[%c608, %c0_104] : memref<888x128xf32, #tpu.memory_space<vmem>>, vector<1x128xf32>
    %287 = vector.broadcast %286 : vector<1x128xf32> to vector<16x128xf32>
    %288 = arith.addf %285, %287 : vector<16x128xf32>
    %cst_105 = arith.constant 0.000000e+00 : f32
    %289 = vector.broadcast %cst_105 : f32 to vector<16x128xf32>
    %290 = arith.maximumf %288, %289 : vector<16x128xf32>
    %c616 = arith.constant 616 : index
    %c0_106 = arith.constant 0 : index
    %291 = vector.load %arg1[%c616, %c0_106] : memref<888x128xf32, #tpu.memory_space<vmem>>, vector<128x128xf32>
    %cst_107 = arith.constant dense<0.000000e+00> : vector<16x128xf32>
    %292 = tpu.matmul %290, %291, %cst_107 {dimension_numbers = #tpu.dot_dimension_numbers<[1], [0], [0], [1], [0, 0, 1, 1], [], []>} : vector<16x128xf32>, vector<128x128xf32>, vector<16x128xf32> -> vector<16x128xf32>
    %c744 = arith.constant 744 : index
    %c0_108 = arith.constant 0 : index
    %293 = vector.load %arg1[%c744, %c0_108] : memref<888x128xf32, #tpu.memory_space<vmem>>, vector<1x128xf32>
    %294 = vector.broadcast %293 : vector<1x128xf32> to vector<16x128xf32>
    %295 = arith.addf %292, %294 : vector<16x128xf32>
    %cst_109 = arith.constant 0.000000e+00 : f32
    %296 = vector.broadcast %cst_109 : f32 to vector<16x128xf32>
    %297 = arith.maximumf %295, %296 : vector<16x128xf32>
    %c752 = arith.constant 752 : index
    %c0_110 = arith.constant 0 : index
    %298 = vector.load %arg1[%c752, %c0_110] : memref<888x128xf32, #tpu.memory_space<vmem>>, vector<128x128xf32>
    %cst_111 = arith.constant dense<0.000000e+00> : vector<16x128xf32>
    %299 = tpu.matmul %297, %298, %cst_111 {dimension_numbers = #tpu.dot_dimension_numbers<[1], [0], [0], [1], [0, 0, 1, 1], [], []>} : vector<16x128xf32>, vector<128x128xf32>, vector<16x128xf32> -> vector<16x128xf32>
    %c880 = arith.constant 880 : index
    %c0_112 = arith.constant 0 : index
    %300 = vector.load %arg1[%c880, %c0_112] : memref<888x128xf32, #tpu.memory_space<vmem>>, vector<1x128xf32>
    %301 = vector.broadcast %300 : vector<1x128xf32> to vector<16x128xf32>
    %302 = arith.addf %299, %301 : vector<16x128xf32>
    %c0_113 = arith.constant 0 : index
    %c0_114 = arith.constant 0 : index
    %303 = vector.load %arg2[%c0_113, %c0_114] : memref<16x128xf32, #tpu.memory_space<vmem>>, vector<16x128xf32>
    tpu.vector_store %arg2[%c0_113, %c0_114], %302 {strides = array<i32>} : memref<16x128xf32, #tpu.memory_space<vmem>>, vector<16x128xf32>,
    return
  }
}

</mosaic_0001>

<bundles_post_ra>
// kernel: forward.1
= control target key start
LH: loop header
LB: loop body
LE: loop exit
PB: predicated region body
PF: predicated region fallthrough
CT: control target
= control target key end

     0   :  { %7 = vsyncpa [#allocation3], 0  ;;  %s4160_s9 = smov [#allocation2]   ;;  %s4478_s0 = inlined_call_operand.vmem [shape: f32[16,7], index: 0, kind: input, shape index: {}]   ;;  %s4479_s1 = inlined_call_operand.hbm [shape: f32[888,128], index: 1, kind: input, shape index: {}]   ;;  %s4480_s2 = inlined_call_operand.vmem [shape: f32[16,128], index: 2, kind: output, shape index: {}]  }
   0x1   :  { %s15_s10 = sshll.u32 %s4160_s9, 4  ;;  %s16_s10 = int_to_ptr.vmem [resolvable:$true] %s15_s10 }
   0x2   :  { %s4146_s11 = scalar_lea.vmem %s16_s10, 14208  ;;  %p4151_p1 = scmp.lt.s32.totalorder %s16_s10, %s16_s10 }
   0x3   :  { %p4147_p0 = scmp.ne.s32.totalorder %s16_s10, %s4146_s11  ;;  %p4152_p2 = scmp.lt.s32.totalorder %s4146_s11, %s4146_s11 }
   0x5   :  { %p4153_p3 = por %p4152_p2, %p4151_p1 }
   0x7   :  { %p4154_p4 = pnand %p4153_p3, %p4147_p0 }
   0x9   :  { %4157 = shalt.err (!%p4154_p4)
}
   0xa   :  { %s4161_s12 = smov 128   ;;  %s4162_s13 = smov 8  }
   0xb   :  { %21 = dma.hbm_to_vmem [thread:$0]  %s4479_s1, 14208, %s16_s10, [#allocation3], %s4161_s12, %s4161_s12, %s4162_s13  }
   0xc   :  { %4158 = dma.done.wait [#allocation3], 14208  }
   0xd   :  { %4159 = vsyncadd [#allocation3], 4294953088  ;;  %vm40_vm0 = vcmask 1046528   ;;  %vm33_vm1 = vcmask 56320   ;;  %v27_v0 = vld [vmem:[#allocation2] sm:$0x7f] }
   0xe   :  { %v25_v1 = vld [vmem:[%s4478_s0] sm:$0xff]  ;;  %v26_v2 = vld [vmem:[%s4478_s0 + $0x8] sm:$0xff]  ;;  %3692 = vmatprep.subr.msk.mxu0 %vm40_vm0, %v27_v0  ;;  %v120_v5 = vld [vmem:[#allocation2 + $0x18] sm:$0xff]  ;;  %vm123_vm2 = vcmask 261120   ;;  %vm215_vm3 = vcmask 64512   ;;  %s4163_s0 = smov 88  }
   0xf   :  { %3694 = vmatprep.mubr.msk.f32.mxu0 %vm33_vm1, %v25_v1  ;;  %v122_v3 = vld [vmem:[#allocation2 + $0x28] sm:$0xff]  ;;  %3693 = vmatpush3.msk.msra.mxu0 %vm40_vm0, %v27_v0  ;;  %v121_v4 = vld [vmem:[#allocation2 + $0x20] sm:$0xff]  ;;  %v119_v6 = vld [vmem:[#allocation2 + $0x10] sm:$0xff]  ;;  %s4164_s1 = smov 96   ;;  %s4165_s20 = smov 120   ;;  %vm313_vm4 = vcmask 130048  }
  0x10   :  { %3697 = vmatprep.subr.mxu1 %v122_v3  ;;  %3695 = vmatmul.mubr.msk.f32.vlgmr.msra.gmra.mxu0 %vm33_vm1, %v26_v2  ;;  %v3388_v8 = vld [vmem:[#allocation2 + $0x8] ss:$0 sm:$0xff]  ;;  %s4166_s21 = smov 64   ;;  %s4167_s22 = smov 56   ;;  %v206_v42 = vld [vmem:[#allocation2 + $0x38] sm:$0xff]  ;;  %v205_v45 = vld [vmem:[#allocation2 + $0x30] sm:$0xff] }
  0x11   :  { %3698 = vmatpush3.msra.mxu1 %v122_v3  ;;  %s4168_s23 = smov 80   ;;  %s4169_s24 = smov 112  }
  0x12   :  { %3699 = vmatprep.subr.mxu1 %v121_v4  ;;  %s4170_s25 = smov 72   ;;  %s4171_s26 = smov 104  }
  0x13   :  { %3700 = vmatpush3.msra.mxu1 %v121_v4  ;;  %s4172_s27 = smov 48   ;;  %s4173_s28 = smov 40  }
  0x14   :  { %3701 = vmatprep.subr.mxu1 %v120_v5 }
  0x15   :  { %3702 = vmatpush3.msra.mxu1 %v120_v5 }
  0x16   :  { %3703 = vmatprep.subr.mxu1 %v119_v6 }
  0x17   :  { %3704 = vmatpush3.msra.mxu1 %v119_v6 }
  0xd0   :  { %v3696_v7 = vpop.f32.mrf.mxu0 }
  0xd1   :  { %v4200_v11 = vadd.f32 %v3696_v7, %v3388_v8 }
  0xd2   :  { %v110_v9 = vpop.f32.mrf.mxu0 }
  0xd3   :  { %v4198_v10 = vadd.f32 %v3388_v8, %v110_v9 }
  0xd5   :  { %3705 = vmatprep.mubr.msk.f32.mxu1 %vm123_vm2, %v4198_v10 }
  0xd6   :  { %3706 = vmatmul.mubr.msk.f32.vlgmr.msra.gmra.mxu1 %vm123_vm2, %v4200_v11 }
 0x196   :  { %v4206_v12 = vpop.f32.mrf.mxu1 }
 0x197   :  { %411 = vrot.lane.b32.xlu1 %v4206_v12, %s4163_s0  ;;  %213 = vrot.lane.b32.xlu0 %v4206_v12, %s4164_s1 }
 0x198   :  { %v4212_v13 = vpop.f32.mrf.mxu1 }
 0x199   :  { %3712 = vmatprep.mubr.msk.f32.mxu1 %vm215_vm3, %v4212_v13 }
 0x19b   :  { %409 = vrot.lane.b32.xlu1 %v4212_v13, %s4163_s0  ;;  %211 = vrot.lane.b32.xlu0 %v4212_v13, %s4164_s1 }
 0x19f   :  { %407 = vrot.lane.b32.xlu1 %v4206_v12, %s4165_s20  ;;  %405 = vrot.lane.b32.xlu0 %v4212_v13, %s4165_s20 }
 0x1a3   :  { %307 = vrot.lane.b32.xlu1 %v4212_v13, %s4166_s21  ;;  %309 = vrot.lane.b32.xlu0 %v4206_v12, %s4166_s21 }
 0x1a7   :  { %504 = vrot.lane.b32.xlu1 %v4212_v13, %s4167_s22  ;;  %506 = vrot.lane.b32.xlu0 %v4206_v12, %s4167_s22 }
 0x209   :  { %v412_v14 = vpop.permute.xlu1 %411  ;;  %v214_v15 = vpop.permute.xlu0 %213 }
 0x20a   :  { %3708 = vmatprep.subr.msk.mxu1 %vm215_vm3, %v214_v15  ;;  %3722 = vmatprep.subr.msk.mxu0 %vm215_vm3, %v412_v14 }
 0x20b   :  { %3709 = vmatpush3.xpose.msk.msra.mxu1 %vm215_vm3, %v214_v15  ;;  %3723 = vmatpush3.xpose.msk.msra.mxu0 %vm215_vm3, %v412_v14 }
 0x20d   :  { %v410_v16 = vpop.permute.xlu1 %409  ;;  %v212_v17 = vpop.permute.xlu0 %211 }
 0x20e   :  { %3710 = vmatprep.subr.msk.mxu1 %vm215_vm3, %v212_v17  ;;  %3724 = vmatprep.subr.msk.mxu0 %vm215_vm3, %v410_v16 }
 0x20f   :  { %3711 = vmatpush3.xpose.msk.msra.mxu1 %vm215_vm3, %v212_v17  ;;  %3725 = vmatpush3.xpose.msk.msra.mxu0 %vm215_vm3, %v410_v16 }
 0x210   :  { %3741 = vmatprep.subr.mxu0 %v205_v45 }
 0x211   :  { %v408_v18 = vpop.permute.xlu1 %407  ;;  %v406_v19 = vpop.permute.xlu0 %405 }
 0x212   :  { %3713 = vmatmul.mubr.msk.f32.vlgmr.msra.gmra.mxu1 %vm215_vm3, %v4206_v12  ;;  %3726 = vmatprep.mubr.msk.f32.mxu0 %vm215_vm3, %v406_v19 }
 0x213   :  { %3727 = vmatmul.mubr.msk.f32.vlgmr.msra.gmra.mxu0 %vm215_vm3, %v408_v18 }
 0x214   :  { %3742 = vmatpush3.msra.mxu0 %v205_v45 }
 0x215   :  { %v310_v20 = vpop.permute.xlu0 %309  ;;  %v308_v21 = vpop.permute.xlu1 %307 }
 0x216   :  { %3715 = vmatprep.subr.mxu1 %v310_v20 }
 0x217   :  { %3716 = vmatpush3.msra.mxu1 %v310_v20 }
 0x218   :  { %3717 = vmatprep.subr.mxu1 %v308_v21 }
 0x219   :  { %v507_v22 = vpop.permute.xlu0 %506  ;;  %3718 = vmatpush3.msra.mxu1 %v308_v21  ;;  %v505_v41 = vpop.permute.xlu1 %504 }
 0x21a   :  { %3729 = vmatprep.subr.mxu1 %v507_v22 }
 0x2d2   :  { %v3714_v23 = vpop.f32.mrf.mxu1 }
 0x2d3   :  { %v3399_v24 = vclamps-f32 %v3714_v23, 5.0  ;;  %v3728_v25 = vpop.f32.mrf.mxu0 }
 0x2d4   :  { %v3407_v26 = vclamps-f32 %v3728_v25, 5.0  ;;  %v290_v27 = vpop.f32.mrf.mxu1 }
 0x2d5   :  { %v305_v28 = vmul.f32 1.442695, %v3399_v24  ;;  %v3398_v29 = vclamps-f32 %v290_v27, 5.0  ;;  %v487_v30 = vpop.f32.mrf.mxu0 }
 0x2d6   :  { %v502_v31 = vmul.f32 1.442695, %v3407_v26  ;;  %v3406_v32 = vclamps-f32 %v487_v30, 5.0  ;;  %v207_v26 = vld [vmem:[#allocation2 + $0x40] sm:$0xff] }
 0x2d7   :  { %4058 = vpow2.f32 %v305_v28  ;;  %v303_v33 = vmul.f32 1.442695, %v3398_v29 }
 0x2d8   :  { %4060 = vpow2.f32 %v502_v31  ;;  %v500_v34 = vmul.f32 1.442695, %v3406_v32 }
 0x2d9   :  { %4062 = vpow2.f32 %v303_v33 }
 0x2da   :  { %4064 = vpow2.f32 %v500_v34 }
 0x2e4   :  { %v4059_v35 = vpop.eup %4058 }
 0x2e5   :  { %v4061_v36 = vpop.eup %4060  ;;  %v398_v43 = vsel %vm313_vm4, %v4059_v35, 0.0 }
 0x2e6   :  { %v4063_v37 = vpop.eup %4062  ;;  %v594_v38 = vsel %vm313_vm4, %v4061_v36, 0.0 }
 0x2e7   :  { %v4065_v39 = vpop.eup %4064  ;;  %595 = vadd.xlane.f32.xlu1 %v594_v38  ;;  %3719 = vmatprep.mubr.msk.f32.mxu1 %vm313_vm4, %v4063_v37  ;;  %v395_v44 = vsel %vm313_vm4, %v4063_v37, 0.0 }
 0x2e8   :  { %3720 = vmatmul.mubr.msk.f32.vlgmr.msra.gmra.mxu1 %vm313_vm4, %v4059_v35  ;;  %v591_v40 = vsel %vm313_vm4, %v4065_v39, 0.0 }
 0x2e9   :  { %3730 = vmatpush3.msra.mxu1 %v507_v22  ;;  %592 = vadd.xlane.f32.xlu0 %v591_v40 }
 0x2ea   :  { %3731 = vmatprep.subr.mxu1 %v505_v41  ;;  %3733 = vmatprep.mubr.msk.f32.mxu1 %vm313_vm4, %v4065_v39 }
 0x2eb   :  { %3732 = vmatpush3.msra.mxu1 %v505_v41 }
 0x2ec   :  { %3734 = vmatmul.mubr.msk.f32.vlgmr.msra.gmra.mxu1 %vm313_vm4, %v4061_v36  ;;  %3736 = vmatprep.subr.mxu1 %v206_v42 }
 0x2ed   :  { %3737 = vmatpush3.msra.mxu1 %v206_v42 }
 0x2f8   :  { %767 = vrot.lane.b32.xlu1 %v4212_v13, %s4168_s23 }
 0x2fc   :  { %765 = vrot.lane.b32.xlu1 %v4206_v12, %s4169_s24 }
 0x2ff   :  { %769 = vrot.lane.b32.xlu0 %v4206_v12, %s4168_s23 }
 0x303   :  { %763 = vrot.lane.b32.xlu0 %v4212_v13, %s4169_s24 }
 0x307   :  { %1048 = vrot.lane.b32.xlu0 %v4206_v12, %s4170_s25 }
 0x30b   :  { %1042 = vrot.lane.b32.xlu0 %v4212_v13, %s4171_s26 }
 0x320   :  { %399 = vadd.xlane.f32.xlu1 %v398_v43 }
 0x32a   :  { %396 = vadd.xlane.f32.xlu0 %v395_v44 }
 0x331   :  { %1046 = vrot.lane.b32.xlu1 %v4212_v13, %s4170_s25 }
 0x335   :  { %1044 = vrot.lane.b32.xlu1 %v4206_v12, %s4171_s26 }
 0x339   :  { %862 = vrot.lane.b32.xlu1 %v4212_v13, %s4172_s27 }
 0x340   :  { %864 = vrot.lane.b32.xlu0 %v4206_v12, %s4172_s27 }
 0x370   :  { %v596_v48 = vpop.xlane.xlu1 %595 }
 0x372   :  { %v593_v46 = vpop.xlane.xlu0 %592 }
 0x373   :  { %4066 = vrcp.f32 %v593_v46  ;;  %v208_v46 = vld [vmem:[#allocation2 + $0x48] sm:$0xff] }
 0x374   :  { %4068 = vrcp.f32 %v596_v48  ;;  %v768_v50 = vpop.permute.xlu1 %767 }
 0x376   :  { %v770_v47 = vpop.permute.xlu0 %769 }
 0x377   :  { %3746 = vmatprep.subr.msk.mxu1 %vm215_vm3, %v770_v47 }
 0x378   :  { %v766_v54 = vpop.permute.xlu1 %765 }
 0x37a   :  { %v764_v49 = vpop.permute.xlu0 %763 }
 0x37e   :  { %v1049_v52 = vpop.permute.xlu0 %1048 }
 0x380   :  { %v4067_v56 = vpop.eup %4066 }
 0x381   :  { %v4069_v58 = vpop.eup %4068 }
 0x382   :  { %v1043_v59 = vpop.permute.xlu0 %1042 }
 0x3a8   :  { %v3721_v51 = vpop.f32.mrf.mxu1 }
 0x3a9   :  { %v400_v61 = vpop.xlane.xlu1 %399 }
 0x3aa   :  { %v386_v53 = vpop.f32.mrf.mxu1  ;;  %4070 = vrcp.f32 %v400_v61  ;;  %v3434_v61 = vld [vmem:[#allocation2 + $0x50] ss:$0 sm:$0xff] }
 0x3ac   :  { %v3735_v55 = vpop.f32.mrf.mxu1 }
 0x3ad   :  { %v600_v62 = vmul.f32 %v4069_v58, %v3735_v55  ;;  %v1047_v1 = vpop.permute.xlu1 %1046 }
 0x3ae   :  { %v582_v57 = vpop.f32.mrf.mxu1 }
 0x3af   :  { %v599_v60 = vmul.f32 %v4067_v56, %v582_v57 }
 0x3b1   :  { %3738 = vmatprep.mubr.msk.f32.mxu1 %vm215_vm3, %v599_v60  ;;  %v1045_v3 = vpop.permute.xlu1 %1044 }
 0x3b2   :  { %3739 = vmatmul.mubr.msk.f32.vlgmr.msra.gmra.mxu1 %vm215_vm3, %v600_v62 }
 0x3b3   :  { %3747 = vmatpush3.xpose.msk.msra.mxu1 %vm215_vm3, %v770_v47  ;;  %v397_v63 = vpop.xlane.xlu0 %396  ;;  %3750 = vmatprep.mubr.msk.f32.mxu1 %vm215_vm3, %v764_v49 }
 0x3b4   :  { %4072 = vrcp.f32 %v397_v63  ;;  %3748 = vmatprep.subr.msk.mxu1 %vm215_vm3, %v768_v50 }
 0x3b5   :  { %v863_v7 = vpop.permute.xlu1 %862 }
 0x3b7   :  { %3749 = vmatpush3.xpose.msk.msra.mxu1 %vm215_vm3, %v768_v50  ;;  %v865_v0 = vpop.permute.xlu0 %864  ;;  %v4071_v2 = vpop.eup %4070 }
 0x3b8   :  { %3765 = vmatprep.subr.msk.mxu1 %vm215_vm3, %v1049_v52  ;;  %3753 = vmatprep.subr.mxu0 %v865_v0  ;;  %v404_v6 = vmul.f32 %v4071_v2, %v3721_v51 }
 0x3ba   :  { %3751 = vmatmul.mubr.msk.f32.vlgmr.msra.gmra.mxu1 %vm215_vm3, %v766_v54 }
 0x3bb   :  { %3766 = vmatpush3.xpose.msk.msra.mxu1 %vm215_vm3, %v1049_v52  ;;  %3769 = vmatprep.mubr.msk.f32.mxu1 %vm215_vm3, %v1043_v59 }
 0x3bc   :  { %3767 = vmatprep.subr.msk.mxu1 %vm215_vm3, %v1047_v1 }
 0x3bf   :  { %3768 = vmatpush3.xpose.msk.msra.mxu1 %vm215_vm3, %v1047_v1 }
 0x3c1   :  { %v4073_v4 = vpop.eup %4072 }
 0x3c2   :  { %3770 = vmatmul.mubr.msk.f32.vlgmr.msra.gmra.mxu1 %vm215_vm3, %v1045_v3  ;;  %v403_v5 = vmul.f32 %v4073_v4, %v386_v53 }
 0x3c4   :  { %3743 = vmatprep.mubr.msk.f32.mxu0 %vm215_vm3, %v403_v5 }
 0x3c5   :  { %3744 = vmatmul.mubr.msk.f32.vlgmr.msra.gmra.mxu0 %vm215_vm3, %v404_v6 }
 0x3c6   :  { %3754 = vmatpush3.msra.mxu0 %v865_v0 }
 0x3c7   :  { %3755 = vmatprep.subr.mxu0 %v863_v7 }
 0x3c8   :  { %3756 = vmatpush3.msra.mxu0 %v863_v7 }
 0x3c9   :  { %3760 = vmatprep.subr.mxu0 %v207_v26 }
 0x472   :  { %v3740_v8 = vpop.f32.mrf.mxu1 }
 0x474   :  { %v4288_v9 = vpop.f32.mrf.mxu1 }
 0x47a   :  { %v3752_v14 = vpop.f32.mrf.mxu1 }
 0x47b   :  { %v3419_v15 = vclamps-f32 %v3752_v14, 5.0  ;;  %v1377_v14 = vld [vmem:[#allocation2 + $0x78] sm:$0xff] }
 0x47c   :  { %v845_v16 = vpop.f32.mrf.mxu1 }
 0x47d   :  { %v860_v17 = vmul.f32 1.442695, %v3419_v15  ;;  %v3418_v18 = vclamps-f32 %v845_v16, 5.0  ;;  %v1376_v15 = vld [vmem:[#allocation2 + $0x70] sm:$0xff]  ;;  %v1375_v16 = vld [vmem:[#allocation2 + $0x68] sm:$0xff] }
 0x47f   :  { %4074 = vpow2.f32 %v860_v17  ;;  %v858_v19 = vmul.f32 1.442695, %v3418_v18  ;;  %v1482_v17 = vld [vmem:[#allocation2 + $0x108] sm:$0xff]  ;;  %v1481_v18 = vld [vmem:[#allocation2 + $0x100] sm:$0xff] }
 0x481   :  { %4076 = vpow2.f32 %v858_v19  ;;  %v1480_v19 = vld [vmem:[#allocation2 + $0xf8] sm:$0xff] }
 0x482   :  { %v3771_v27 = vpop.f32.mrf.mxu1 }
 0x483   :  { %v3429_v29 = vclamps-f32 %v3771_v27, 5.0  ;;  %v1472_v27 = vld [vmem:[#allocation2 + $0xb8] sm:$0xff] }
 0x484   :  { %v1124_v28 = vpop.f32.mrf.mxu1 }
 0x485   :  { %v3745_v20 = vpop.f32.mrf.mxu0  ;;  %v3428_v30 = vclamps-f32 %v1124_v28, 5.0  ;;  %v1139_v31 = vmul.f32 1.442695, %v3429_v29  ;;  %v1471_v28 = vld [vmem:[#allocation2 + $0xb0] sm:$0xff] }
 0x486   :  { %v760_v21 = vadd.f32 %v3745_v20, %v3740_v8  ;;  %v1479_v20 = vld [vmem:[#allocation2 + $0xf0] sm:$0xff] }
 0x487   :  { %v1137_v32 = vmul.f32 1.442695, %v3428_v30  ;;  %4078 = vpow2.f32 %v1139_v31 }
 0x489   :  { %4080 = vpow2.f32 %v1137_v32 }
 0x48c   :  { %v4075_v22 = vpop.eup %4074 }
 0x48d   :  { %v952_v23 = vsel %vm313_vm4, %v4075_v22, 0.0 }
 0x48e   :  { %v4077_v24 = vpop.eup %4076  ;;  %953 = vadd.xlane.f32.xlu1 %v952_v23  ;;  %v1476_v23 = vld [vmem:[#allocation2 + $0xd8] sm:$0xff] }
 0x48f   :  { %3757 = vmatprep.mubr.msk.f32.mxu0 %vm313_vm4, %v4077_v24  ;;  %v949_v25 = vsel %vm313_vm4, %v4077_v24, 0.0  ;;  %v1475_v24 = vld [vmem:[#allocation2 + $0xd0] sm:$0xff] }
 0x490   :  { %950 = vadd.xlane.f32.xlu0 %v949_v25  ;;  %3758 = vmatmul.mubr.msk.f32.vlgmr.msra.gmra.mxu0 %vm313_vm4, %v4075_v22  ;;  %v1477_v22 = vld [vmem:[#allocation2 + $0xe0] sm:$0xff]  ;;  %v1474_v25 = vld [vmem:[#allocation2 + $0xc8] sm:$0xff] }
 0x491   :  { %3761 = vmatpush3.msra.mxu0 %v207_v26  ;;  %v1473_v26 = vld [vmem:[#allocation2 + $0xc0] sm:$0xff] }
 0x494   :  { %v4079_v33 = vpop.eup %4078 }
 0x495   :  { %v1231_v35 = vsel %vm313_vm4, %v4079_v33, 0.0 }
 0x496   :  { %v4081_v34 = vpop.eup %4080 }
 0x497   :  { %v1228_v36 = vsel %vm313_vm4, %v4081_v34, 0.0 }
 0x49f   :  { %1141 = vrot.lane.b32.xlu1 %v4212_v13, %s4173_s28 }
 0x4a6   :  { %1143 = vrot.lane.b32.xlu0 %v4206_v12, %s4173_s28  ;;  %v754_v12 = vpop.f32.mrf.mxu0 }
 0x4a7   :  { %v755_v50 = vadd.f32 %v754_v12, %v4288_v9  ;;  %v1378_v9 = vld [vmem:[#allocation2 + $0x80] sm:$0xff] }
 0x4a8   :  { %3784 = vmatprep.subr.mxu1 %v1378_v9 }
 0x4a9   :  { %3785 = vmatpush3.msra.mxu1 %v1378_v9 }
 0x4aa   :  { %3786 = vmatprep.subr.mxu1 %v1377_v14 }
 0x4ab   :  { %3787 = vmatpush3.msra.mxu1 %v1377_v14 }
 0x4ac   :  { %3788 = vmatprep.subr.mxu1 %v1376_v15 }
 0x4ad   :  { %3789 = vmatpush3.msra.mxu1 %v1376_v15  ;;  %v1612_v15 = vld [vmem:[#allocation2 + $0x140] sm:$0xff] }
 0x4ae   :  { %3790 = vmatprep.subr.mxu1 %v1375_v16 }
 0x4af   :  { %3791 = vmatpush3.msra.mxu1 %v1375_v16  ;;  %v1611_v16 = vld [vmem:[#allocation2 + $0x138] sm:$0xff] }
 0x4b0   :  { %3830 = vmatprep.subr.mxu1 %v1612_v15 }
 0x4c3   :  { %1232 = vadd.xlane.f32.xlu1 %v1231_v35 }
 0x4c5   :  { %1229 = vadd.xlane.f32.xlu0 %v1228_v36 }
 0x517   :  { %v954_v38 = vpop.xlane.xlu1 %953 }
 0x519   :  { %v951_v13 = vpop.xlane.xlu0 %950 }
 0x51a   :  { %4082 = vrcp.f32 %v951_v13 }
 0x51b   :  { %4084 = vrcp.f32 %v954_v38  ;;  %v1142_v45 = vpop.permute.xlu1 %1141 }
 0x51d   :  { %v1144_v37 = vpop.permute.xlu0 %1143 }
 0x51e   :  { %3772 = vmatprep.subr.mxu0 %v1144_v37 }
 0x527   :  { %v4083_v40 = vpop.eup %4082 }
 0x528   :  { %v4085_v42 = vpop.eup %4084 }
 0x54c   :  { %v1233_v48 = vpop.xlane.xlu1 %1232 }
 0x54e   :  { %v1230_v47 = vpop.xlane.xlu0 %1229 }
 0x54f   :  { %4086 = vrcp.f32 %v1230_v47  ;;  %v3436_v47 = vld [vmem:[#allocation2 + $0x60] ss:$0 sm:$0xff] }
 0x550   :  { %v3759_v39 = vpop.f32.mrf.mxu0  ;;  %4088 = vrcp.f32 %v1233_v48 }
 0x551   :  { %v958_v44 = vmul.f32 %v4085_v42, %v3759_v39 }
 0x552   :  { %v940_v41 = vpop.f32.mrf.mxu0 }
 0x553   :  { %v957_v43 = vmul.f32 %v4083_v40, %v940_v41 }
 0x555   :  { %3762 = vmatprep.mubr.msk.f32.mxu0 %vm215_vm3, %v957_v43  ;;  %v3435_v43 = vld [vmem:[#allocation2 + $0x58] ss:$0 sm:$0xff] }
 0x556   :  { %3763 = vmatmul.mubr.msk.f32.vlgmr.msra.gmra.mxu0 %vm215_vm3, %v958_v44 }
 0x557   :  { %3773 = vmatpush3.msra.mxu0 %v1144_v37  ;;  %3776 = vmatprep.mubr.msk.f32.mxu0 %vm313_vm4, %v4081_v34 }
 0x558   :  { %3774 = vmatprep.subr.mxu0 %v1142_v45 }
 0x559   :  { %3775 = vmatpush3.msra.mxu0 %v1142_v45 }
 0x55a   :  { %3777 = vmatmul.mubr.msk.f32.vlgmr.msra.gmra.mxu0 %vm313_vm4, %v4079_v33  ;;  %3779 = vmatprep.subr.mxu0 %v208_v46 }
 0x55b   :  { %3780 = vmatpush3.msra.mxu0 %v208_v46 }
 0x55c   :  { %v4087_v55 = vpop.eup %4086  ;;  %3795 = vmatprep.subr.mxu0 %v1482_v17 }
 0x55d   :  { %v4089_v57 = vpop.eup %4088 }
 0x616   :  { %v3764_v49 = vpop.f32.mrf.mxu0 }
 0x617   :  { %v1041_v51 = vadd.f32 %v3764_v49, %v760_v21  ;;  %v1478_v21 = vld [vmem:[#allocation2 + $0xe8] sm:$0xff] }
 0x618   :  { %v1031_v52 = vpop.f32.mrf.mxu0 }
 0x619   :  { %v1040_v53 = vadd.f32 %v1031_v52, %v755_v50 }
 0x61a   :  { %v3778_v54 = vpop.f32.mrf.mxu0 }
 0x61b   :  { %v1237_v59 = vmul.f32 %v4089_v57, %v3778_v54  ;;  %v1469_v54 = vld [vmem:[#allocation2 + $0xa0] sm:$0xff]  ;;  %v3437_v57 = vld [vmem:[#allocation2 + $0x88] ss:$0 sm:$0xff] }
 0x61c   :  { %v1219_v56 = vpop.f32.mrf.mxu0 }
 0x61d   :  { %v1236_v58 = vmul.f32 %v4087_v55, %v1219_v56  ;;  %v1468_v55 = vld [vmem:[#allocation2 + $0x98] sm:$0xff]  ;;  %v1467_v56 = vld [vmem:[#allocation2 + $0x90] sm:$0xff] }
 0x61f   :  { %3781 = vmatprep.mubr.msk.f32.mxu0 %vm215_vm3, %v1236_v58 }
 0x620   :  { %3782 = vmatmul.mubr.msk.f32.vlgmr.msra.gmra.mxu0 %vm215_vm3, %v1237_v59 }
 0x621   :  { %3796 = vmatpush3.msra.mxu0 %v1482_v17  ;;  %v1610_v17 = vld [vmem:[#allocation2 + $0x130] sm:$0xff] }
 0x622   :  { %3797 = vmatprep.subr.mxu0 %v1481_v18 }
 0x623   :  { %3798 = vmatpush3.msra.mxu0 %v1481_v18  ;;  %v1609_v18 = vld [vmem:[#allocation2 + $0x128] sm:$0xff] }
 0x624   :  { %3799 = vmatprep.subr.mxu0 %v1480_v19 }
 0x625   :  { %3800 = vmatpush3.msra.mxu0 %v1480_v19 }
 0x626   :  { %3801 = vmatprep.subr.mxu0 %v1479_v20 }
 0x627   :  { %3802 = vmatpush3.msra.mxu0 %v1479_v20 }
 0x628   :  { %3803 = vmatprep.subr.mxu0 %v1478_v21 }
 0x629   :  { %3804 = vmatpush3.msra.mxu0 %v1478_v21 }
 0x62a   :  { %3805 = vmatprep.subr.mxu0 %v1477_v22 }
 0x62b   :  { %3806 = vmatpush3.msra.mxu0 %v1477_v22 }
 0x62c   :  { %3807 = vmatprep.subr.mxu0 %v1476_v23 }
 0x62d   :  { %3808 = vmatpush3.msra.mxu0 %v1476_v23 }
 0x62e   :  { %3809 = vmatprep.subr.mxu0 %v1475_v24 }
 0x62f   :  { %3810 = vmatpush3.msra.mxu0 %v1475_v24 }
 0x630   :  { %3811 = vmatprep.subr.mxu0 %v1474_v25 }
 0x631   :  { %3812 = vmatpush3.msra.mxu0 %v1474_v25 }
 0x632   :  { %3813 = vmatprep.subr.mxu0 %v1473_v26 }
 0x633   :  { %3814 = vmatpush3.msra.mxu0 %v1473_v26 }
 0x634   :  { %3815 = vmatprep.subr.mxu0 %v1472_v27 }
 0x635   :  { %3816 = vmatpush3.msra.mxu0 %v1472_v27 }
 0x636   :  { %3817 = vmatprep.subr.mxu0 %v1471_v28 }
 0x637   :  { %3818 = vmatpush3.msra.mxu0 %v1471_v28 }
 0x6e0   :  { %v3783_v60 = vpop.f32.mrf.mxu0 }
 0x6e1   :  { %v1320_v62 = vadd.f32 %v3783_v60, %v1041_v51 }
 0x6e2   :  { %v1310_v63 = vpop.f32.mrf.mxu0 }
 0x6e3   :  { %v1327_v0 = vadd.f32 %v3434_v61, %v1320_v62  ;;  %v1319_v1 = vadd.f32 %v1310_v63, %v1040_v53  ;;  %v1470_v53 = vld [vmem:[#allocation2 + $0xa8] sm:$0xff] }
 0x6e4   :  { %3819 = vmatprep.subr.mxu0 %v1470_v53 }
 0x6e5   :  { %v4308_v2 = vadd.f32 %v1327_v0, %v4200_v11  ;;  %v1326_v3 = vadd.f32 %v3434_v61, %v1319_v1  ;;  %3820 = vmatpush3.msra.mxu0 %v1470_v53  ;;  %v3440_v0 = vld [vmem:[#allocation2 + $0x110] ss:$0 sm:$0xff] }
 0x6e6   :  { %3821 = vmatprep.subr.mxu0 %v1469_v54 }
 0x6e7   :  { %v4311_v4 = vadd.f32 %v1326_v3, %v4198_v10  ;;  %v1335_v5 = vsel %vm123_vm2, %v4308_v2, 0.0  ;;  %v1342_v11 = vmul.f32 %v4308_v2, %v4308_v2  ;;  %3822 = vmatpush3.msra.mxu0 %v1469_v54 }
 0x6e8   :  { %1336 = vadd.xlane.f32.xlu0 %v1335_v5  ;;  %3823 = vmatprep.subr.mxu0 %v1468_v55 }
 0x6e9   :  { %v1341_v6 = vmul.f32 %v4311_v4, %v4311_v4  ;;  %v1332_v8 = vsel %vm123_vm2, %v4311_v4, 0.0  ;;  %v1346_v10 = vsel %vm123_vm2, %v1342_v11, 0.0  ;;  %3824 = vmatpush3.msra.mxu0 %v1468_v55 }
 0x6ea   :  { %3825 = vmatprep.subr.mxu0 %v1467_v56 }
 0x6eb   :  { %v1343_v7 = vsel %vm123_vm2, %v1341_v6, 0.0  ;;  %3826 = vmatpush3.msra.mxu0 %v1467_v56 }
 0x6ec   :  { %1344 = vadd.xlane.f32.xlu1 %v1343_v7  ;;  %1333 = vadd.xlane.f32.xlu0 %v1332_v8 }
 0x6f0   :  { %1347 = vadd.xlane.f32.xlu0 %v1346_v10 }
 0x771   :  { %v1337_v29 = vpop.xlane.xlu0 %1336 }
 0x772   :  { %v1340_v32 = vmul.f32 0.03125, %v1337_v29 }
 0x774   :  { %v1352_v13 = vmul.f32 %v1340_v32, %v1340_v32  ;;  %v1356_v44 = vsub.f32 %v4308_v2, %v1340_v32 }
 0x775   :  { %v1345_v30 = vpop.xlane.xlu1 %1344  ;;  %v1334_v31 = vpop.xlane.xlu0 %1333 }
 0x776   :  { %v1339_v33 = vmul.f32 0.03125, %v1334_v31  ;;  %v1349_v34 = vmul.f32 0.03125, %v1345_v30 }
 0x778   :  { %v1351_v35 = vmul.f32 %v1339_v33, %v1339_v33  ;;  %v1355_v41 = vsub.f32 %v4311_v4, %v1339_v33 }
 0x779   :  { %v1348_v36 = vpop.xlane.xlu0 %1347 }
 0x77a   :  { %v1353_v37 = vsub.f32 %v1349_v34, %v1351_v35  ;;  %v1350_v38 = vmul.f32 0.03125, %v1348_v36  ;;  %v3441_v36 = vld [vmem:[#allocation2 + $0x118] ss:$0 sm:$0xff] }
 0x77c   :  { %v1357_v12 = vadd.f32 1e-05, %v1353_v37  ;;  %v1354_v39 = vsub.f32 %v1350_v38, %v1352_v13 }
 0x77e   :  { %4090 = vrsqrt.f32 %v1357_v12  ;;  %v1358_v40 = vadd.f32 1e-05, %v1354_v39  ;;  %v3442_v39 = vld [vmem:[#allocation2 + $0x120] ss:$0 sm:$0xff] }
 0x780   :  { %4092 = vrsqrt.f32 %v1358_v40 }
 0x78b   :  { %v4091_v42 = vpop.eup %4090 }
 0x78c   :  { %v1361_v45 = vmul.f32 %v4091_v42, %v1355_v41 }
 0x78d   :  { %v4093_v46 = vpop.eup %4092 }
 0x78e   :  { %v1367_v48 = vmul.f32 %v3435_v43, %v1361_v45  ;;  %v1362_v49 = vmul.f32 %v4093_v46, %v1356_v44 }
 0x790   :  { %v1368_v50 = vmul.f32 %v3435_v43, %v1362_v49  ;;  %v1373_v51 = vadd.f32 %v3436_v47, %v1367_v48 }
 0x792   :  { %v1374_v52 = vadd.f32 %v3436_v47, %v1368_v50  ;;  %3792 = vmatprep.mubr.msk.f32.mxu1 %vm123_vm2, %v1373_v51 }
 0x794   :  { %3793 = vmatmul.mubr.msk.f32.vlgmr.msra.gmra.mxu1 %vm123_vm2, %v1374_v52 }
 0x795   :  { %3831 = vmatpush3.msra.mxu1 %v1612_v15 }
 0x796   :  { %3832 = vmatprep.subr.mxu1 %v1611_v16 }
 0x797   :  { %3833 = vmatpush3.msra.mxu1 %v1611_v16  ;;  %v1694_v16 = vld [vmem:[#allocation2 + $0x148] sm:$0xff] }
 0x798   :  { %3834 = vmatprep.subr.mxu1 %v1610_v17 }
 0x799   :  { %3835 = vmatpush3.msra.mxu1 %v1610_v17 }
 0x79a   :  { %3836 = vmatprep.subr.mxu1 %v1609_v18 }
 0x79b   :  { %3837 = vmatpush3.msra.mxu1 %v1609_v18 }
 0x854   :  { %v3794_v58 = vpop.f32.mrf.mxu1 }
 0x855   :  { %v1462_v59 = vadd.f32 %v3794_v58, %v3437_v57 }
 0x856   :  { %v1456_v60 = vpop.f32.mrf.mxu1 }
 0x857   :  { %v1457_v61 = vadd.f32 %v3437_v57, %v1456_v60  ;;  %v1466_v63 = vmax.f32 %v1462_v59, 0.0 }
 0x859   :  { %v1465_v62 = vmax.f32 %v1457_v61, 0.0 }
 0x85b   :  { %3827 = vmatprep.mubr.f32.mxu0 %v1465_v62 }
 0x85c   :  { %3828 = vmatmul.mubr.f32.vlgmr.msra.gmra.mxu0 %v1466_v63 }
 0x91c   :  { %v3829_v1 = vpop.f32.mrf.mxu0 }
 0x91d   :  { %v1560_v2 = vadd.f32 %v3829_v1, %v3440_v0 }
 0x91e   :  { %v1554_v3 = vpop.f32.mrf.mxu0 }
 0x91f   :  { %v1564_v4 = vadd.f32 %v1560_v2, %v1374_v52  ;;  %v1555_v5 = vadd.f32 %v3440_v0, %v1554_v3 }
 0x921   :  { %v1563_v6 = vadd.f32 %v1555_v5, %v1373_v51  ;;  %v1570_v7 = vsel %vm123_vm2, %v1564_v4, 0.0  ;;  %v1576_v8 = vmul.f32 %v1564_v4, %v1564_v4 }
 0x922   :  { %1571 = vadd.xlane.f32.xlu0 %v1570_v7 }
 0x923   :  { %v1567_v11 = vsel %vm123_vm2, %v1563_v6, 0.0  ;;  %v1575_v10 = vmul.f32 %v1563_v6, %v1563_v6  ;;  %v1580_v9 = vsel %vm123_vm2, %v1576_v8, 0.0 }
 0x924   :  { %1568 = vadd.xlane.f32.xlu1 %v1567_v11 }
 0x925   :  { %v1577_v14 = vsel %vm123_vm2, %v1575_v10, 0.0 }
 0x926   :  { %1581 = vadd.xlane.f32.xlu0 %v1580_v9  ;;  %v1695_v9 = vld [vmem:[#allocation2 + $0x150] sm:$0xff] }
 0x928   :  { %1578 = vadd.xlane.f32.xlu1 %v1577_v14 }
 0x9ab   :  { %v1572_v19 = vpop.xlane.xlu0 %1571 }
 0x9ac   :  { %v1574_v20 = vmul.f32 0.03125, %v1572_v19 }
 0x9ad   :  { %v1569_v21 = vpop.xlane.xlu1 %1568 }
 0x9ae   :  { %v1573_v22 = vmul.f32 0.03125, %v1569_v21  ;;  %v1586_v24 = vmul.f32 %v1574_v20, %v1574_v20  ;;  %v1590_v33 = vsub.f32 %v1564_v4, %v1574_v20 }
 0x9af   :  { %v1582_v23 = vpop.xlane.xlu0 %1581 }
 0x9b0   :  { %v1584_v25 = vmul.f32 0.03125, %v1582_v23  ;;  %v1585_v27 = vmul.f32 %v1573_v22, %v1573_v22  ;;  %v1589_v35 = vsub.f32 %v1563_v6, %v1573_v22 }
 0x9b1   :  { %v1579_v26 = vpop.xlane.xlu1 %1578 }
 0x9b2   :  { %v1588_v28 = vsub.f32 %v1584_v25, %v1586_v24  ;;  %v1583_v29 = vmul.f32 0.03125, %v1579_v26 }
 0x9b4   :  { %v1592_v30 = vadd.f32 1e-05, %v1588_v28  ;;  %v1587_v31 = vsub.f32 %v1583_v29, %v1585_v27 }
 0x9b6   :  { %4094 = vrsqrt.f32 %v1592_v30  ;;  %v1591_v32 = vadd.f32 1e-05, %v1587_v31 }
 0x9b8   :  { %4096 = vrsqrt.f32 %v1591_v32 }
 0x9c3   :  { %v4095_v34 = vpop.eup %4094 }
 0x9c4   :  { %v1596_v13 = vmul.f32 %v4095_v34, %v1590_v33 }
 0x9c5   :  { %v4097_v37 = vpop.eup %4096 }
 0x9c6   :  { %v1595_v38 = vmul.f32 %v4097_v37, %v1589_v35  ;;  %v1602_v12 = vmul.f32 %v3441_v36, %v1596_v13 }
 0x9c8   :  { %v1601_v40 = vmul.f32 %v3441_v36, %v1595_v38  ;;  %v4333_v42 = vadd.f32 %v3442_v39, %v1602_v12 }
 0x9ca   :  { %v4331_v41 = vadd.f32 %v3442_v39, %v1601_v40 }
 0x9cc   :  { %3838 = vmatprep.mubr.msk.f32.mxu1 %vm123_vm2, %v4331_v41 }
 0x9cd   :  { %3839 = vmatmul.mubr.msk.f32.vlgmr.msra.gmra.mxu1 %vm123_vm2, %v4333_v42 }
 0xa8d   :  { %v4339_v43 = vpop.f32.mrf.mxu1 }
 0xa8e   :  { %1702 = vrot.lane.b32.xlu1 %v4339_v43, %s4164_s1 }
 0xa8f   :  { %v4343_v44 = vpop.f32.mrf.mxu1 }
 0xa90   :  { %1700 = vrot.lane.b32.xlu0 %v4343_v44, %s4164_s1  ;;  %3845 = vmatprep.mubr.msk.f32.mxu1 %vm215_vm3, %v4343_v44 }
 0xa92   :  { %1797 = vrot.lane.b32.xlu1 %v4339_v43, %s4166_s21 }
 0xa94   :  { %1898 = vrot.lane.b32.xlu0 %v4339_v43, %s4163_s0 }
 0xa96   :  { %1795 = vrot.lane.b32.xlu1 %v4343_v44, %s4166_s21 }
 0xa98   :  { %1892 = vrot.lane.b32.xlu0 %v4343_v44, %s4165_s20 }
 0xa9a   :  { %1896 = vrot.lane.b32.xlu1 %v4343_v44, %s4163_s0 }
 0xa9c   :  { %1993 = vrot.lane.b32.xlu0 %v4339_v43, %s4167_s22 }
 0xa9e   :  { %1894 = vrot.lane.b32.xlu1 %v4339_v43, %s4165_s20 }
 0xaa2   :  { %1991 = vrot.lane.b32.xlu1 %v4343_v44, %s4167_s22 }
 0xb00   :  { %v1703_v45 = vpop.permute.xlu1 %1702 }
 0xb01   :  { %3841 = vmatprep.subr.msk.mxu1 %vm215_vm3, %v1703_v45 }
 0xb02   :  { %3842 = vmatpush3.xpose.msk.msra.mxu1 %vm215_vm3, %v1703_v45  ;;  %v1701_v46 = vpop.permute.xlu0 %1700 }
 0xb03   :  { %3843 = vmatprep.subr.msk.mxu1 %vm215_vm3, %v1701_v46 }
 0xb04   :  { %v1798_v47 = vpop.permute.xlu1 %1797 }
 0xb06   :  { %3844 = vmatpush3.xpose.msk.msra.mxu1 %vm215_vm3, %v1701_v46  ;;  %v1899_v48 = vpop.permute.xlu0 %1898 }
 0xb07   :  { %3848 = vmatprep.subr.mxu1 %v1798_v47 }
 0xb08   :  { %v1796_v49 = vpop.permute.xlu1 %1795 }
 0xb09   :  { %3846 = vmatmul.mubr.msk.f32.vlgmr.msra.gmra.mxu1 %vm215_vm3, %v4339_v43 }
 0xb0a   :  { %v1893_v50 = vpop.permute.xlu0 %1892  ;;  %3849 = vmatpush3.msra.mxu1 %v1798_v47 }
 0xb0b   :  { %3850 = vmatprep.subr.mxu1 %v1796_v49 }
 0xb0c   :  { %v1897_v51 = vpop.permute.xlu1 %1896  ;;  %3851 = vmatpush3.msra.mxu1 %v1796_v49 }
 0xb0d   :  { %3855 = vmatprep.subr.msk.mxu1 %vm215_vm3, %v1899_v48 }
 0xb0e   :  { %v1994_v52 = vpop.permute.xlu0 %1993 }
 0xb0f   :  { %3862 = vmatprep.subr.mxu0 %v1994_v52 }
 0xb10   :  { %v1895_v53 = vpop.permute.xlu1 %1894  ;;  %3863 = vmatpush3.msra.mxu0 %v1994_v52 }
 0xb14   :  { %v1992_v54 = vpop.permute.xlu1 %1991 }
 0xb15   :  { %3864 = vmatprep.subr.mxu0 %v1992_v54 }
 0xb16   :  { %3865 = vmatpush3.msra.mxu0 %v1992_v54 }
 0xb17   :  { %3874 = vmatprep.subr.mxu0 %v1694_v16 }
 0xbc9   :  { %v3847_v55 = vpop.f32.mrf.mxu1 }
 0xbca   :  { %v3450_v56 = vclamps-f32 %v3847_v55, 5.0 }
 0xbcb   :  { %v1778_v57 = vpop.f32.mrf.mxu1 }
 0xbcc   :  { %v3449_v58 = vclamps-f32 %v1778_v57, 5.0  ;;  %v1793_v59 = vmul.f32 1.442695, %v3450_v56  ;;  %v1696_v57 = vld [vmem:[#allocation2 + $0x158] sm:$0xff] }
 0xbce   :  { %v1791_v60 = vmul.f32 1.442695, %v3449_v58 }
 0xbd0   :  { %4098 = vpow2.f32 %v1791_v60 }
 0xbd1   :  { %4100 = vpow2.f32 %v1793_v59 }
 0xbdd   :  { %v4099_v61 = vpop.eup %4098 }
 0xbde   :  { %v4101_v62 = vpop.eup %4100  ;;  %3852 = vmatprep.mubr.msk.f32.mxu1 %vm313_vm4, %v4099_v61  ;;  %v1882_v15 = vsel %vm313_vm4, %v4099_v61, 0.0 }
 0xbdf   :  { %3853 = vmatmul.mubr.msk.f32.vlgmr.msra.gmra.mxu1 %vm313_vm4, %v4101_v62  ;;  %v1885_v14 = vsel %vm313_vm4, %v4101_v62, 0.0 }
 0xbe0   :  { %3856 = vmatpush3.xpose.msk.msra.mxu1 %vm215_vm3, %v1899_v48  ;;  %3859 = vmatprep.mubr.msk.f32.mxu1 %vm215_vm3, %v1893_v50 }
 0xbe1   :  { %3857 = vmatprep.subr.msk.mxu1 %vm215_vm3, %v1897_v51 }
 0xbe4   :  { %3858 = vmatpush3.xpose.msk.msra.mxu1 %vm215_vm3, %v1897_v51 }
 0xbe5   :  { %3869 = vmatprep.subr.mxu1 %v1695_v9 }
 0xbe7   :  { %3860 = vmatmul.mubr.msk.f32.vlgmr.msra.gmra.mxu1 %vm215_vm3, %v1895_v53 }
 0xbe8   :  { %3870 = vmatpush3.msra.mxu1 %v1695_v9 }
 0xc9f   :  { %v4379_v63 = vpop.f32.mrf.mxu1 }
 0xca1   :  { %v4381_v0 = vpop.f32.mrf.mxu1 }
 0xca7   :  { %v3861_v1 = vpop.f32.mrf.mxu1 }
 0xca8   :  { %v3458_v2 = vclamps-f32 %v3861_v1, 5.0 }
 0xca9   :  { %v1974_v3 = vpop.f32.mrf.mxu1 }
 0xcaa   :  { %v1989_v4 = vmul.f32 1.442695, %v3458_v2  ;;  %v3457_v5 = vclamps-f32 %v1974_v3, 5.0 }
 0xcac   :  { %4102 = vpow2.f32 %v1989_v4  ;;  %v1987_v6 = vmul.f32 1.442695, %v3457_v5 }
 0xcae   :  { %4104 = vpow2.f32 %v1987_v6 }
 0xcb9   :  { %v4103_v7 = vpop.eup %4102 }
 0xcba   :  { %v2081_v8 = vsel %vm313_vm4, %v4103_v7, 0.0 }
 0xcbb   :  { %v4105_v11 = vpop.eup %4104  ;;  %2082 = vadd.xlane.f32.xlu1 %v2081_v8 }
 0xcbc   :  { %3866 = vmatprep.mubr.msk.f32.mxu0 %vm313_vm4, %v4105_v11  ;;  %v2078_v10 = vsel %vm313_vm4, %v4105_v11, 0.0 }
 0xcbd   :  { %2079 = vadd.xlane.f32.xlu0 %v2078_v10  ;;  %3867 = vmatmul.mubr.msk.f32.vlgmr.msra.gmra.mxu0 %vm313_vm4, %v4103_v7 }
 0xcbe   :  { %3875 = vmatpush3.msra.mxu0 %v1694_v16 }
 0xccc   :  { %2254 = vrot.lane.b32.xlu1 %v4343_v44, %s4168_s23 }
 0xcd0   :  { %2252 = vrot.lane.b32.xlu1 %v4339_v43, %s4169_s24 }
 0xcd3   :  { %2256 = vrot.lane.b32.xlu0 %v4339_v43, %s4168_s23 }
 0xcd7   :  { %2250 = vrot.lane.b32.xlu0 %v4343_v44, %s4169_s24 }
 0xcf4   :  { %1886 = vadd.xlane.f32.xlu1 %v1885_v14 }
 0xcf6   :  { %1883 = vadd.xlane.f32.xlu0 %v1882_v15  ;;  %v1697_v15 = vld [vmem:[#allocation2 + $0x160] sm:$0xff] }
 0xd05   :  { %2533 = vrot.lane.b32.xlu1 %v4343_v44, %s4170_s25 }
 0xd09   :  { %2531 = vrot.lane.b32.xlu1 %v4339_v43, %s4171_s26 }
 0xd0c   :  { %2535 = vrot.lane.b32.xlu0 %v4339_v43, %s4170_s25 }
 0xd0d   :  { %2349 = vrot.lane.b32.xlu1 %v4343_v44, %s4172_s27 }
 0xd10   :  { %2529 = vrot.lane.b32.xlu0 %v4343_v44, %s4171_s26 }
 0xd14   :  { %2351 = vrot.lane.b32.xlu0 %v4339_v43, %s4172_s27 }
 0xd44   :  { %v2083_v19 = vpop.xlane.xlu1 %2082 }
 0xd46   :  { %v2080_v17 = vpop.xlane.xlu0 %2079 }
 0xd47   :  { %4106 = vrcp.f32 %v2080_v17 }
 0xd48   :  { %4108 = vrcp.f32 %v2083_v19  ;;  %v2255_v20 = vpop.permute.xlu1 %2254 }
 0xd4a   :  { %v2257_v18 = vpop.permute.xlu0 %2256 }
 0xd4b   :  { %3879 = vmatprep.subr.msk.mxu1 %vm215_vm3, %v2257_v18 }
 0xd4c   :  { %v2253_v21 = vpop.permute.xlu1 %2252 }
 0xd4e   :  { %v2251_v22 = vpop.permute.xlu0 %2250 }
 0xd54   :  { %v4107_v25 = vpop.eup %4106 }
 0xd55   :  { %v4109_v28 = vpop.eup %4108 }
 0xd7d   :  { %v1887_v23 = vpop.xlane.xlu1 %1886  ;;  %v3868_v24 = vpop.f32.mrf.mxu0 }
 0xd7e   :  { %4110 = vrcp.f32 %v1887_v23  ;;  %v2087_v30 = vmul.f32 %v4109_v28, %v3868_v24 }
 0xd7f   :  { %v1884_v26 = vpop.xlane.xlu0 %1883  ;;  %v2069_v27 = vpop.f32.mrf.mxu0 }
 0xd80   :  { %4112 = vrcp.f32 %v1884_v26  ;;  %v2086_v29 = vmul.f32 %v4107_v25, %v2069_v27 }
 0xd81   :  { %v2534_v32 = vpop.permute.xlu1 %2533 }
 0xd82   :  { %3871 = vmatprep.mubr.msk.f32.mxu1 %vm215_vm3, %v2086_v29 }
 0xd83   :  { %v2536_v31 = vpop.permute.xlu0 %2535  ;;  %3872 = vmatmul.mubr.msk.f32.vlgmr.msra.gmra.mxu1 %vm215_vm3, %v2087_v30  ;;  %v3485_v30 = vld [vmem:[#allocation2 + $0x168] ss:$0 sm:$0xff] }
 0xd84   :  { %3880 = vmatpush3.xpose.msk.msra.mxu1 %vm215_vm3, %v2257_v18  ;;  %3883 = vmatprep.mubr.msk.f32.mxu1 %vm215_vm3, %v2251_v22 }
 0xd85   :  { %3881 = vmatprep.subr.msk.mxu1 %vm215_vm3, %v2255_v20  ;;  %v2532_v36 = vpop.permute.xlu1 %2531 }
 0xd87   :  { %v2530_v33 = vpop.permute.xlu0 %2529 }
 0xd88   :  { %3882 = vmatpush3.xpose.msk.msra.mxu1 %vm215_vm3, %v2255_v20 }
 0xd89   :  { %3898 = vmatprep.subr.msk.mxu1 %vm215_vm3, %v2536_v31  ;;  %v2350_v12 = vpop.permute.xlu1 %2349 }
 0xd8b   :  { %3884 = vmatmul.mubr.msk.f32.vlgmr.msra.gmra.mxu1 %vm215_vm3, %v2253_v21  ;;  %v2352_v34 = vpop.permute.xlu0 %2351  ;;  %v4111_v35 = vpop.eup %4110 }
 0xd8c   :  { %3899 = vmatpush3.xpose.msk.msra.mxu1 %vm215_vm3, %v2536_v31  ;;  %3902 = vmatprep.mubr.msk.f32.mxu1 %vm215_vm3, %v2530_v33  ;;  %v1891_v38 = vmul.f32 %v4111_v35, %v4379_v63 }
 0xd8d   :  { %v4113_v13 = vpop.eup %4112  ;;  %3886 = vmatprep.subr.mxu0 %v2352_v34  ;;  %3900 = vmatprep.subr.msk.mxu1 %vm215_vm3, %v2534_v32 }
 0xd8e   :  { %v1890_v37 = vmul.f32 %v4113_v13, %v4381_v0 }
 0xd90   :  { %3901 = vmatpush3.xpose.msk.msra.mxu1 %vm215_vm3, %v2534_v32  ;;  %3876 = vmatprep.mubr.msk.f32.mxu0 %vm215_vm3, %v1890_v37 }
 0xd91   :  { %3877 = vmatmul.mubr.msk.f32.vlgmr.msra.gmra.mxu0 %vm215_vm3, %v1891_v38 }
 0xd92   :  { %3887 = vmatpush3.msra.mxu0 %v2352_v34 }
 0xd93   :  { %3888 = vmatprep.subr.mxu0 %v2350_v12  ;;  %3903 = vmatmul.mubr.msk.f32.vlgmr.msra.gmra.mxu1 %vm215_vm3, %v2532_v36 }
 0xd94   :  { %3889 = vmatpush3.msra.mxu0 %v2350_v12 }
 0xd95   :  { %3893 = vmatprep.subr.mxu0 %v1696_v57 }
 0xe43   :  { %v3873_v39 = vpop.f32.mrf.mxu1 }
 0xe45   :  { %v4427_v40 = vpop.f32.mrf.mxu1 }
 0xe4b   :  { %v3885_v45 = vpop.f32.mrf.mxu1 }
 0xe4c   :  { %v3470_v46 = vclamps-f32 %v3885_v45, 5.0  ;;  %v2863_v45 = vld [vmem:[#allocation2 + $0x190] sm:$0xff] }
 0xe4d   :  { %v2332_v47 = vpop.f32.mrf.mxu1 }
 0xe4e   :  { %v2347_v48 = vmul.f32 1.442695, %v3470_v46  ;;  %v3469_v49 = vclamps-f32 %v2332_v47, 5.0  ;;  %v2862_v46 = vld [vmem:[#allocation2 + $0x188] sm:$0xff]  ;;  %v2861_v47 = vld [vmem:[#allocation2 + $0x180] sm:$0xff] }
 0xe50   :  { %4114 = vpow2.f32 %v2347_v48  ;;  %v2345_v50 = vmul.f32 1.442695, %v3469_v49  ;;  %v2968_v48 = vld [vmem:[#allocation2 + $0x220] sm:$0xff]  ;;  %v2967_v49 = vld [vmem:[#allocation2 + $0x218] sm:$0xff] }
 0xe51   :  { %v3878_v51 = vpop.f32.mrf.mxu0 }
 0xe52   :  { %4116 = vpow2.f32 %v2345_v50  ;;  %v2247_v52 = vadd.f32 %v3878_v51, %v3873_v39  ;;  %v2966_v50 = vld [vmem:[#allocation2 + $0x210] sm:$0xff]  ;;  %v2965_v51 = vld [vmem:[#allocation2 + $0x208] sm:$0xff] }
 0xe53   :  { %v3904_v58 = vpop.f32.mrf.mxu1 }
 0xe54   :  { %v3480_v60 = vclamps-f32 %v3904_v58, 5.0  ;;  %v2958_v58 = vld [vmem:[#allocation2 + $0x1d0] sm:$0xff] }
 0xe55   :  { %v2611_v59 = vpop.f32.mrf.mxu1 }
 0xe56   :  { %v3479_v61 = vclamps-f32 %v2611_v59, 5.0  ;;  %v2626_v62 = vmul.f32 1.442695, %v3480_v60  ;;  %v2957_v59 = vld [vmem:[#allocation2 + $0x1c8] sm:$0xff] }
 0xe58   :  { %v2624_v63 = vmul.f32 1.442695, %v3479_v61  ;;  %4118 = vpow2.f32 %v2626_v62 }
 0xe5a   :  { %4120 = vpow2.f32 %v2624_v63 }
 0xe5d   :  { %v4115_v53 = vpop.eup %4114 }
 0xe5e   :  { %v2439_v54 = vsel %vm313_vm4, %v4115_v53, 0.0 }
 0xe5f   :  { %v4117_v55 = vpop.eup %4116  ;;  %2440 = vadd.xlane.f32.xlu1 %v2439_v54  ;;  %v2962_v54 = vld [vmem:[#allocation2 + $0x1f0] sm:$0xff] }
 0xe60   :  { %3890 = vmatprep.mubr.msk.f32.mxu0 %vm313_vm4, %v4117_v55  ;;  %v2436_v56 = vsel %vm313_vm4, %v4117_v55, 0.0  ;;  %v2961_v55 = vld [vmem:[#allocation2 + $0x1e8] sm:$0xff] }
 0xe61   :  { %2437 = vadd.xlane.f32.xlu0 %v2436_v56  ;;  %3891 = vmatmul.mubr.msk.f32.vlgmr.msra.gmra.mxu0 %vm313_vm4, %v4115_v53  ;;  %v2963_v53 = vld [vmem:[#allocation2 + $0x1f8] sm:$0xff]  ;;  %v2960_v56 = vld [vmem:[#allocation2 + $0x1e0] sm:$0xff] }
 0xe62   :  { %3894 = vmatpush3.msra.mxu0 %v1696_v57  ;;  %v2959_v57 = vld [vmem:[#allocation2 + $0x1d8] sm:$0xff] }
 0xe65   :  { %v4119_v0 = vpop.eup %4118 }
 0xe66   :  { %v2718_v2 = vsel %vm313_vm4, %v4119_v0, 0.0 }
 0xe67   :  { %v4121_v1 = vpop.eup %4120 }
 0xe68   :  { %v2715_v3 = vsel %vm313_vm4, %v4121_v1, 0.0 }
 0xe70   :  { %2628 = vrot.lane.b32.xlu1 %v4343_v44, %s4173_s28 }
 0xe77   :  { %2630 = vrot.lane.b32.xlu0 %v4339_v43, %s4173_s28  ;;  %v2241_v43 = vpop.f32.mrf.mxu0 }
 0xe78   :  { %v2242_v19 = vadd.f32 %v2241_v43, %v4427_v40  ;;  %v2864_v40 = vld [vmem:[#allocation2 + $0x198] sm:$0xff] }
 0xe79   :  { %3917 = vmatprep.subr.mxu1 %v2864_v40 }
 0xe7a   :  { %3918 = vmatpush3.msra.mxu1 %v2864_v40 }
 0xe7b   :  { %3919 = vmatprep.subr.mxu1 %v2863_v45 }
 0xe7c   :  { %3920 = vmatpush3.msra.mxu1 %v2863_v45 }
 0xe7d   :  { %3921 = vmatprep.subr.mxu1 %v2862_v46 }
 0xe7e   :  { %3922 = vmatpush3.msra.mxu1 %v2862_v46  ;;  %v3098_v46 = vld [vmem:[#allocation2 + $0x258] sm:$0xff] }
 0xe7f   :  { %3923 = vmatprep.subr.mxu1 %v2861_v47 }
 0xe80   :  { %3924 = vmatpush3.msra.mxu1 %v2861_v47  ;;  %v3097_v47 = vld [vmem:[#allocation2 + $0x250] sm:$0xff] }
 0xe81   :  { %3963 = vmatprep.subr.mxu1 %v3098_v46 }
 0xe94   :  { %2719 = vadd.xlane.f32.xlu1 %v2718_v2 }
 0xe96   :  { %2716 = vadd.xlane.f32.xlu0 %v2715_v3 }
 0xee8   :  { %v2441_v5 = vpop.xlane.xlu1 %2440 }
 0xeea   :  { %v2438_v44 = vpop.xlane.xlu0 %2437 }
 0xeeb   :  { %4122 = vrcp.f32 %v2438_v44 }
 0xeec   :  { %4124 = vrcp.f32 %v2441_v5  ;;  %v2629_v14 = vpop.permute.xlu1 %2628 }
 0xeee   :  { %v2631_v4 = vpop.permute.xlu0 %2630 }
 0xeef   :  { %3905 = vmatprep.subr.mxu0 %v2631_v4 }
 0xef8   :  { %v4123_v7 = vpop.eup %4122 }
 0xef9   :  { %v4125_v11 = vpop.eup %4124 }
 0xf1d   :  { %v2720_v17 = vpop.xlane.xlu1 %2719 }
 0xf1f   :  { %v2717_v16 = vpop.xlane.xlu0 %2716 }
 0xf20   :  { %4126 = vrcp.f32 %v2717_v16  ;;  %v3487_v16 = vld [vmem:[#allocation2 + $0x178] ss:$0 sm:$0xff] }
 0xf21   :  { %v3892_v6 = vpop.f32.mrf.mxu0  ;;  %4128 = vrcp.f32 %v2720_v17 }
 0xf22   :  { %v2445_v9 = vmul.f32 %v4125_v11, %v3892_v6 }
 0xf23   :  { %v2427_v8 = vpop.f32.mrf.mxu0 }
 0xf24   :  { %v2444_v10 = vmul.f32 %v4123_v7, %v2427_v8 }
 0xf26   :  { %3895 = vmatprep.mubr.msk.f32.mxu0 %vm215_vm3, %v2444_v10  ;;  %v3486_v10 = vld [vmem:[#allocation2 + $0x170] ss:$0 sm:$0xff] }
 0xf27   :  { %3896 = vmatmul.mubr.msk.f32.vlgmr.msra.gmra.mxu0 %vm215_vm3, %v2445_v9 }
 0xf28   :  { %3906 = vmatpush3.msra.mxu0 %v2631_v4  ;;  %3909 = vmatprep.mubr.msk.f32.mxu0 %vm313_vm4, %v4121_v1 }
 0xf29   :  { %3907 = vmatprep.subr.mxu0 %v2629_v14 }
 0xf2a   :  { %3908 = vmatpush3.msra.mxu0 %v2629_v14 }
 0xf2b   :  { %3910 = vmatmul.mubr.msk.f32.vlgmr.msra.gmra.mxu0 %vm313_vm4, %v4119_v0  ;;  %3912 = vmatprep.subr.mxu0 %v1697_v15 }
 0xf2c   :  { %3913 = vmatpush3.msra.mxu0 %v1697_v15 }
 0xf2d   :  { %v4127_v24 = vpop.eup %4126  ;;  %3928 = vmatprep.subr.mxu0 %v2968_v48 }
 0xf2e   :  { %v4129_v26 = vpop.eup %4128 }
 0xfe7   :  { %v3897_v18 = vpop.f32.mrf.mxu0 }
 0xfe8   :  { %v2528_v20 = vadd.f32 %v3897_v18, %v2247_v52  ;;  %v2964_v52 = vld [vmem:[#allocation2 + $0x200] sm:$0xff] }
 0xfe9   :  { %v2518_v21 = vpop.f32.mrf.mxu0 }
 0xfea   :  { %v2527_v22 = vadd.f32 %v2518_v21, %v2242_v19 }
 0xfeb   :  { %v3911_v23 = vpop.f32.mrf.mxu0 }
 0xfec   :  { %v2724_v28 = vmul.f32 %v4129_v26, %v3911_v23  ;;  %v2955_v23 = vld [vmem:[#allocation2 + $0x1b8] sm:$0xff]  ;;  %v3488_v26 = vld [vmem:[#allocation2 + $0x1a0] ss:$0 sm:$0xff] }
 0xfed   :  { %v2706_v25 = vpop.f32.mrf.mxu0 }
 0xfee   :  { %v2723_v27 = vmul.f32 %v4127_v24, %v2706_v25  ;;  %v2954_v24 = vld [vmem:[#allocation2 + $0x1b0] sm:$0xff]  ;;  %v2953_v25 = vld [vmem:[#allocation2 + $0x1a8] sm:$0xff] }
 0xff0   :  { %3914 = vmatprep.mubr.msk.f32.mxu0 %vm215_vm3, %v2723_v27 }
 0xff1   :  { %3915 = vmatmul.mubr.msk.f32.vlgmr.msra.gmra.mxu0 %vm215_vm3, %v2724_v28 }
 0xff2   :  { %3929 = vmatpush3.msra.mxu0 %v2968_v48  ;;  %v3096_v48 = vld [vmem:[#allocation2 + $0x248] sm:$0xff] }
 0xff3   :  { %3930 = vmatprep.subr.mxu0 %v2967_v49 }
 0xff4   :  { %3931 = vmatpush3.msra.mxu0 %v2967_v49  ;;  %v3095_v49 = vld [vmem:[#allocation2 + $0x240] sm:$0xff] }
 0xff5   :  { %3932 = vmatprep.subr.mxu0 %v2966_v50 }
 0xff6   :  { %3933 = vmatpush3.msra.mxu0 %v2966_v50  ;;  %v3202_v50 = vld [vmem:[#allocation2 + $0x2e0] sm:$0xff] }
 0xff7   :  { %3934 = vmatprep.subr.mxu0 %v2965_v51 }
 0xff8   :  { %3935 = vmatpush3.msra.mxu0 %v2965_v51 }
 0xff9   :  { %3936 = vmatprep.subr.mxu0 %v2964_v52 }
 0xffa   :  { %3937 = vmatpush3.msra.mxu0 %v2964_v52 }
 0xffb   :  { %3938 = vmatprep.subr.mxu0 %v2963_v53 }
 0xffc   :  { %3939 = vmatpush3.msra.mxu0 %v2963_v53 }
 0xffd   :  { %3940 = vmatprep.subr.mxu0 %v2962_v54 }
 0xffe   :  { %3941 = vmatpush3.msra.mxu0 %v2962_v54 }
 0xfff   :  { %3942 = vmatprep.subr.mxu0 %v2961_v55 }
0x1000   :  { %3943 = vmatpush3.msra.mxu0 %v2961_v55 }
0x1001   :  { %3944 = vmatprep.subr.mxu0 %v2960_v56 }
0x1002   :  { %3945 = vmatpush3.msra.mxu0 %v2960_v56 }
0x1003   :  { %3946 = vmatprep.subr.mxu0 %v2959_v57 }
0x1004   :  { %3947 = vmatpush3.msra.mxu0 %v2959_v57 }
0x1005   :  { %3948 = vmatprep.subr.mxu0 %v2958_v58 }
0x1006   :  { %3949 = vmatpush3.msra.mxu0 %v2958_v58 }
0x1007   :  { %3950 = vmatprep.subr.mxu0 %v2957_v59 }
0x1008   :  { %3951 = vmatpush3.msra.mxu0 %v2957_v59 }
0x10b1   :  { %v3916_v29 = vpop.f32.mrf.mxu0 }
0x10b2   :  { %v2807_v31 = vadd.f32 %v3916_v29, %v2528_v20 }
0x10b3   :  { %v2797_v32 = vpop.f32.mrf.mxu0 }
0x10b4   :  { %v2814_v33 = vadd.f32 %v3485_v30, %v2807_v31  ;;  %v2806_v34 = vadd.f32 %v2797_v32, %v2527_v22  ;;  %v2956_v22 = vld [vmem:[#allocation2 + $0x1c0] sm:$0xff] }
0x10b5   :  { %3952 = vmatprep.subr.mxu0 %v2956_v22 }
0x10b6   :  { %v4447_v35 = vadd.f32 %v2814_v33, %v4333_v42  ;;  %v2813_v36 = vadd.f32 %v3485_v30, %v2806_v34  ;;  %3953 = vmatpush3.msra.mxu0 %v2956_v22  ;;  %v3491_v33 = vld [vmem:[#allocation2 + $0x228] ss:$0 sm:$0xff]  ;;  %v3192_v22 = vld [vmem:[#allocation2 + $0x290] sm:$0xff] }
0x10b7   :  { %3954 = vmatprep.subr.mxu0 %v2955_v23 }
0x10b8   :  { %v4450_v13 = vadd.f32 %v2813_v36, %v4331_v41  ;;  %v2822_v37 = vsel %vm123_vm2, %v4447_v35, 0.0  ;;  %v2828_v42 = vmul.f32 %v4447_v35, %v4447_v35  ;;  %3955 = vmatpush3.msra.mxu0 %v2955_v23  ;;  %v3191_v23 = vld [vmem:[#allocation2 + $0x288] sm:$0xff] }
0x10b9   :  { %2823 = vadd.xlane.f32.xlu0 %v2822_v37  ;;  %3956 = vmatprep.subr.mxu0 %v2954_v24 }
0x10ba   :  { %v2827_v38 = vmul.f32 %v4450_v13, %v4450_v13  ;;  %v2819_v39 = vsel %vm123_vm2, %v4450_v13, 0.0  ;;  %v2832_v41 = vsel %vm123_vm2, %v2828_v42, 0.0  ;;  %3957 = vmatpush3.msra.mxu0 %v2954_v24  ;;  %v3190_v24 = vld [vmem:[#allocation2 + $0x280] sm:$0xff] }
0x10bb   :  { %3958 = vmatprep.subr.mxu0 %v2953_v25 }
0x10bc   :  { %v2829_v12 = vsel %vm123_vm2, %v2827_v38, 0.0  ;;  %3959 = vmatpush3.msra.mxu0 %v2953_v25  ;;  %v3189_v25 = vld [vmem:[#allocation2 + $0x278] sm:$0xff] }
0x10bd   :  { %2830 = vadd.xlane.f32.xlu1 %v2829_v12  ;;  %2820 = vadd.xlane.f32.xlu0 %v2819_v39 }
0x10c1   :  { %2833 = vadd.xlane.f32.xlu0 %v2832_v41 }
0x1142   :  { %v2824_v60 = vpop.xlane.xlu0 %2823 }
0x1143   :  { %v2826_v63 = vmul.f32 0.03125, %v2824_v60 }
0x1145   :  { %v2838_v44 = vmul.f32 %v2826_v63, %v2826_v63  ;;  %v2842_v9 = vsub.f32 %v4447_v35, %v2826_v63 }
0x1146   :  { %v2831_v61 = vpop.xlane.xlu1 %2830  ;;  %v2821_v62 = vpop.xlane.xlu0 %2820 }
0x1147   :  { %v2825_v0 = vmul.f32 0.03125, %v2821_v62  ;;  %v2835_v1 = vmul.f32 0.03125, %v2831_v61 }
0x1149   :  { %v2837_v2 = vmul.f32 %v2825_v0, %v2825_v0  ;;  %v2841_v8 = vsub.f32 %v4450_v13, %v2825_v0 }
0x114a   :  { %v2834_v3 = vpop.xlane.xlu0 %2833 }
0x114b   :  { %v2839_v4 = vsub.f32 %v2835_v1, %v2837_v2  ;;  %v2836_v5 = vmul.f32 0.03125, %v2834_v3 }
0x114d   :  { %v2843_v43 = vadd.f32 1e-05, %v2839_v4  ;;  %v2840_v6 = vsub.f32 %v2836_v5, %v2838_v44  ;;  %v3492_v44 = vld [vmem:[#allocation2 + $0x230] ss:$0 sm:$0xff] }
0x114f   :  { %4130 = vrsqrt.f32 %v2843_v43  ;;  %v2844_v7 = vadd.f32 1e-05, %v2840_v6 }
0x1151   :  { %4132 = vrsqrt.f32 %v2844_v7  ;;  %v3493_v7 = vld [vmem:[#allocation2 + $0x238] ss:$0 sm:$0xff] }
0x115c   :  { %v4131_v11 = vpop.eup %4130 }
0x115d   :  { %v2847_v14 = vmul.f32 %v4131_v11, %v2841_v8 }
0x115e   :  { %v4133_v15 = vpop.eup %4132 }
0x115f   :  { %v2853_v17 = vmul.f32 %v3486_v10, %v2847_v14  ;;  %v2848_v18 = vmul.f32 %v4133_v15, %v2842_v9  ;;  %v3201_v9 = vld [vmem:[#allocation2 + $0x2d8] sm:$0xff]  ;;  %v3200_v14 = vld [vmem:[#allocation2 + $0x2d0] sm:$0xff]  ;;  %v3199_v15 = vld [vmem:[#allocation2 + $0x2c8] sm:$0xff] }
0x1161   :  { %v2854_v19 = vmul.f32 %v3486_v10, %v2848_v18  ;;  %v2859_v20 = vadd.f32 %v3487_v16, %v2853_v17  ;;  %v3197_v17 = vld [vmem:[#allocation2 + $0x2b8] sm:$0xff]  ;;  %v3196_v18 = vld [vmem:[#allocation2 + $0x2b0] sm:$0xff] }
0x1163   :  { %v2860_v21 = vadd.f32 %v3487_v16, %v2854_v19  ;;  %3925 = vmatprep.mubr.msk.f32.mxu1 %vm123_vm2, %v2859_v20  ;;  %v3198_v16 = vld [vmem:[#allocation2 + $0x2c0] sm:$0xff]  ;;  %v3195_v19 = vld [vmem:[#allocation2 + $0x2a8] sm:$0xff] }
0x1165   :  { %3926 = vmatmul.mubr.msk.f32.vlgmr.msra.gmra.mxu1 %vm123_vm2, %v2860_v21 }
0x1166   :  { %3964 = vmatpush3.msra.mxu1 %v3098_v46 }
0x1167   :  { %3965 = vmatprep.subr.mxu1 %v3097_v47 }
0x1168   :  { %3966 = vmatpush3.msra.mxu1 %v3097_v47  ;;  %v3288_v47 = vld [vmem:[#allocation2 + $0x308] sm:$0xff] }
0x1169   :  { %3967 = vmatprep.subr.mxu1 %v3096_v48 }
0x116a   :  { %3968 = vmatpush3.msra.mxu1 %v3096_v48  ;;  %v3287_v48 = vld [vmem:[#allocation2 + $0x300] sm:$0xff] }
0x116b   :  { %3969 = vmatprep.subr.mxu1 %v3095_v49 }
0x116c   :  { %3970 = vmatpush3.msra.mxu1 %v3095_v49  ;;  %v3286_v49 = vld [vmem:[#allocation2 + $0x2f8] sm:$0xff] }
0x116d   :  { %3974 = vmatprep.subr.mxu1 %v3202_v50 }
0x1225   :  { %v3927_v27 = vpop.f32.mrf.mxu1 }
0x1226   :  { %v2948_v28 = vadd.f32 %v3927_v27, %v3488_v26  ;;  %v3187_v27 = vld [vmem:[#allocation2 + $0x268] sm:$0xff] }
0x1227   :  { %v2942_v29 = vpop.f32.mrf.mxu1 }
0x1228   :  { %v2943_v30 = vadd.f32 %v3488_v26, %v2942_v29  ;;  %v2952_v32 = vmax.f32 %v2948_v28, 0.0  ;;  %v3188_v26 = vld [vmem:[#allocation2 + $0x270] sm:$0xff]  ;;  %v3300_v28 = vld [vmem:[#allocation2 + $0x368] sm:$0xff]  ;;  %v3299_v29 = vld [vmem:[#allocation2 + $0x360] sm:$0xff] }
0x1229   :  { %4009 = vmatprep.subr.mxu0 %v3300_v28 }
0x122a   :  { %v2951_v31 = vmax.f32 %v2943_v30, 0.0  ;;  %v3298_v30 = vld [vmem:[#allocation2 + $0x358] sm:$0xff] }
0x122c   :  { %3960 = vmatprep.mubr.f32.mxu0 %v2951_v31  ;;  %v3297_v31 = vld [vmem:[#allocation2 + $0x350] sm:$0xff] }
0x122d   :  { %3961 = vmatmul.mubr.f32.vlgmr.msra.gmra.mxu0 %v2952_v32  ;;  %v3296_v32 = vld [vmem:[#allocation2 + $0x348] sm:$0xff] }
0x122e   :  { %4010 = vmatpush3.msra.mxu0 %v3300_v28 }
0x122f   :  { %4011 = vmatprep.subr.mxu0 %v3299_v29 }
0x1230   :  { %4012 = vmatpush3.msra.mxu0 %v3299_v29 }
0x1231   :  { %4013 = vmatprep.subr.mxu0 %v3298_v30 }
0x1232   :  { %4014 = vmatpush3.msra.mxu0 %v3298_v30 }
0x1233   :  { %4015 = vmatprep.subr.mxu0 %v3297_v31 }
0x1234   :  { %4016 = vmatpush3.msra.mxu0 %v3297_v31 }
0x1235   :  { %4017 = vmatprep.subr.mxu0 %v3296_v32 }
0x1236   :  { %4018 = vmatpush3.msra.mxu0 %v3296_v32 }
0x12ed   :  { %v3962_v34 = vpop.f32.mrf.mxu0 }
0x12ee   :  { %v3046_v35 = vadd.f32 %v3962_v34, %v3491_v33  ;;  %v3294_v34 = vld [vmem:[#allocation2 + $0x338] sm:$0xff] }
0x12ef   :  { %v3040_v36 = vpop.f32.mrf.mxu0 }
0x12f0   :  { %v3050_v13 = vadd.f32 %v3046_v35, %v2860_v21  ;;  %v3041_v37 = vadd.f32 %v3491_v33, %v3040_v36  ;;  %v3193_v21 = vld [vmem:[#allocation2 + $0x298] sm:$0xff]  ;;  %v3295_v33 = vld [vmem:[#allocation2 + $0x340] sm:$0xff]  ;;  %v3293_v35 = vld [vmem:[#allocation2 + $0x330] sm:$0xff] }
0x12f1   :  { %4019 = vmatprep.subr.mxu0 %v3295_v33  ;;  %v3292_v36 = vld [vmem:[#allocation2 + $0x328] sm:$0xff] }
0x12f2   :  { %v3049_v38 = vadd.f32 %v3041_v37, %v2859_v20  ;;  %v3056_v12 = vsel %vm123_vm2, %v3050_v13, 0.0  ;;  %v3062_v39 = vmul.f32 %v3050_v13, %v3050_v13  ;;  %v3194_v20 = vld [vmem:[#allocation2 + $0x2a0] sm:$0xff]  ;;  %4020 = vmatpush3.msra.mxu0 %v3295_v33  ;;  %v3290_v37 = vld [vmem:[#allocation2 + $0x318] sm:$0xff] }
0x12f3   :  { %3057 = vadd.xlane.f32.xlu0 %v3056_v12  ;;  %4021 = vmatprep.subr.mxu0 %v3294_v34  ;;  %v3494_v12 = vld [vmem:[#allocation2 + $0x260] ss:$0 sm:$0xff] }
0x12f4   :  { %v3053_v42 = vsel %vm123_vm2, %v3049_v38, 0.0  ;;  %v3061_v41 = vmul.f32 %v3049_v38, %v3049_v38  ;;  %v3066_v40 = vsel %vm123_vm2, %v3062_v39, 0.0  ;;  %4022 = vmatpush3.msra.mxu0 %v3294_v34 }
0x12f5   :  { %3054 = vadd.xlane.f32.xlu1 %v3053_v42  ;;  %4023 = vmatprep.subr.mxu0 %v3293_v35 }
0x12f6   :  { %v3063_v45 = vsel %vm123_vm2, %v3061_v41, 0.0  ;;  %4024 = vmatpush3.msra.mxu0 %v3293_v35 }
0x12f7   :  { %3067 = vadd.xlane.f32.xlu0 %v3066_v40  ;;  %4025 = vmatprep.subr.mxu0 %v3292_v36 }
0x12f8   :  { %4026 = vmatpush3.msra.mxu0 %v3292_v36 }
0x12f9   :  { %3064 = vadd.xlane.f32.xlu1 %v3063_v45 }
0x137c   :  { %v3058_v51 = vpop.xlane.xlu0 %3057 }
0x137d   :  { %v3060_v52 = vmul.f32 0.03125, %v3058_v51  ;;  %v3497_v51 = vld [vmem:[#allocation2 + $0x2e8] ss:$0 sm:$0xff] }
0x137e   :  { %v3055_v53 = vpop.xlane.xlu1 %3054 }
0x137f   :  { %v3059_v54 = vmul.f32 0.03125, %v3055_v53  ;;  %v3072_v56 = vmul.f32 %v3060_v52, %v3060_v52  ;;  %v3076_v1 = vsub.f32 %v3050_v13, %v3060_v52  ;;  %v3291_v13 = vld [vmem:[#allocation2 + $0x320] sm:$0xff] }
0x1380   :  { %v3068_v55 = vpop.xlane.xlu0 %3067  ;;  %4027 = vmatprep.subr.mxu0 %v3291_v13 }
0x1381   :  { %v3070_v57 = vmul.f32 0.03125, %v3068_v55  ;;  %v3071_v59 = vmul.f32 %v3059_v54, %v3059_v54  ;;  %v3075_v3 = vsub.f32 %v3049_v38, %v3059_v54  ;;  %4028 = vmatpush3.msra.mxu0 %v3291_v13  ;;  %v3289_v38 = vld [vmem:[#allocation2 + $0x310] sm:$0xff] }
0x1382   :  { %v3065_v58 = vpop.xlane.xlu1 %3064  ;;  %4029 = vmatprep.subr.mxu0 %v3290_v37 }
0x1383   :  { %v3074_v60 = vsub.f32 %v3070_v57, %v3072_v56  ;;  %v3069_v61 = vmul.f32 0.03125, %v3065_v58  ;;  %4030 = vmatpush3.msra.mxu0 %v3290_v37  ;;  %v3498_v58 = vld [vmem:[#allocation2 + $0x370] ss:$0 sm:$0xff] }
0x1384   :  { %4031 = vmatprep.subr.mxu0 %v3289_v38 }
0x1385   :  { %v3078_v62 = vadd.f32 1e-05, %v3074_v60  ;;  %v3073_v63 = vsub.f32 %v3069_v61, %v3071_v59  ;;  %4032 = vmatpush3.msra.mxu0 %v3289_v38 }
0x1386   :  { %4033 = vmatprep.subr.mxu0 %v3288_v47 }
0x1387   :  { %4134 = vrsqrt.f32 %v3078_v62  ;;  %v3077_v0 = vadd.f32 1e-05, %v3073_v63  ;;  %4034 = vmatpush3.msra.mxu0 %v3288_v47 }
0x1388   :  { %4035 = vmatprep.subr.mxu0 %v3287_v48 }
0x1389   :  { %4136 = vrsqrt.f32 %v3077_v0  ;;  %4036 = vmatpush3.msra.mxu0 %v3287_v48 }
0x138a   :  { %4037 = vmatprep.subr.mxu0 %v3286_v49 }
0x138b   :  { %4038 = vmatpush3.msra.mxu0 %v3286_v49 }
0x1394   :  { %v4135_v2 = vpop.eup %4134 }
0x1395   :  { %v3082_v4 = vmul.f32 %v4135_v2, %v3076_v1 }
0x1396   :  { %v4137_v5 = vpop.eup %4136 }
0x1397   :  { %v3081_v43 = vmul.f32 %v4137_v5, %v3075_v3  ;;  %v3088_v6 = vmul.f32 %v3492_v44, %v3082_v4 }
0x1399   :  { %v3087_v8 = vmul.f32 %v3492_v44, %v3081_v43  ;;  %v3094_v10 = vadd.f32 %v3493_v7, %v3088_v6 }
0x139b   :  { %v3093_v11 = vadd.f32 %v3493_v7, %v3087_v8 }
0x139d   :  { %3971 = vmatprep.mubr.msk.f32.mxu1 %vm123_vm2, %v3093_v11 }
0x139e   :  { %3972 = vmatmul.mubr.msk.f32.vlgmr.msra.gmra.mxu1 %vm123_vm2, %v3094_v10 }
0x139f   :  { %3975 = vmatpush3.msra.mxu1 %v3202_v50  ;;  %v3285_v50 = vld [vmem:[#allocation2 + $0x2f0] sm:$0xff] }
0x13a0   :  { %3976 = vmatprep.subr.mxu1 %v3201_v9  ;;  %4039 = vmatprep.subr.mxu0 %v3285_v50 }
0x13a1   :  { %3977 = vmatpush3.msra.mxu1 %v3201_v9  ;;  %4040 = vmatpush3.msra.mxu0 %v3285_v50 }
0x13a2   :  { %3978 = vmatprep.subr.mxu1 %v3200_v14 }
0x13a3   :  { %3979 = vmatpush3.msra.mxu1 %v3200_v14 }
0x13a4   :  { %3980 = vmatprep.subr.mxu1 %v3199_v15 }
0x13a5   :  { %3981 = vmatpush3.msra.mxu1 %v3199_v15 }
0x13a6   :  { %3982 = vmatprep.subr.mxu1 %v3198_v16 }
0x13a7   :  { %3983 = vmatpush3.msra.mxu1 %v3198_v16 }
0x13a8   :  { %3984 = vmatprep.subr.mxu1 %v3197_v17 }
0x13a9   :  { %3985 = vmatpush3.msra.mxu1 %v3197_v17 }
0x13aa   :  { %3986 = vmatprep.subr.mxu1 %v3196_v18 }
0x13ab   :  { %3987 = vmatpush3.msra.mxu1 %v3196_v18 }
0x13ac   :  { %3988 = vmatprep.subr.mxu1 %v3195_v19 }
0x13ad   :  { %3989 = vmatpush3.msra.mxu1 %v3195_v19 }
0x13ae   :  { %3990 = vmatprep.subr.mxu1 %v3194_v20 }
0x13af   :  { %3991 = vmatpush3.msra.mxu1 %v3194_v20 }
0x13b0   :  { %3992 = vmatprep.subr.mxu1 %v3193_v21 }
0x13b1   :  { %3993 = vmatpush3.msra.mxu1 %v3193_v21 }
0x13b2   :  { %3994 = vmatprep.subr.mxu1 %v3192_v22 }
0x13b3   :  { %3995 = vmatpush3.msra.mxu1 %v3192_v22 }
0x13b4   :  { %3996 = vmatprep.subr.mxu1 %v3191_v23 }
0x13b5   :  { %3997 = vmatpush3.msra.mxu1 %v3191_v23 }
0x13b6   :  { %3998 = vmatprep.subr.mxu1 %v3190_v24 }
0x13b7   :  { %3999 = vmatpush3.msra.mxu1 %v3190_v24 }
0x13b8   :  { %4000 = vmatprep.subr.mxu1 %v3189_v25 }
0x13b9   :  { %4001 = vmatpush3.msra.mxu1 %v3189_v25 }
0x13ba   :  { %4002 = vmatprep.subr.mxu1 %v3188_v26 }
0x13bb   :  { %4003 = vmatpush3.msra.mxu1 %v3188_v26 }
0x13bc   :  { %4004 = vmatprep.subr.mxu1 %v3187_v27 }
0x13bd   :  { %4005 = vmatpush3.msra.mxu1 %v3187_v27 }
0x145e   :  { %v3973_v39 = vpop.f32.mrf.mxu1 }
0x145f   :  { %v3182_v42 = vadd.f32 %v3973_v39, %v3494_v12 }
0x1460   :  { %v3176_v41 = vpop.f32.mrf.mxu1 }
0x1461   :  { %v3177_v40 = vadd.f32 %v3494_v12, %v3176_v41  ;;  %v3186_v46 = vmax.f32 %v3182_v42, 0.0 }
0x1463   :  { %v3185_v45 = vmax.f32 %v3177_v40, 0.0 }
0x1465   :  { %4006 = vmatprep.mubr.f32.mxu1 %v3185_v45 }
0x1466   :  { %4007 = vmatmul.mubr.f32.vlgmr.msra.gmra.mxu1 %v3186_v46 }
0x1526   :  { %v4008_v52 = vpop.f32.mrf.mxu1 }
0x1527   :  { %v3280_v53 = vadd.f32 %v4008_v52, %v3497_v51 }
0x1528   :  { %v3274_v54 = vpop.f32.mrf.mxu1 }
0x1529   :  { %v3275_v55 = vadd.f32 %v3497_v51, %v3274_v54  ;;  %v3284_v57 = vmax.f32 %v3280_v53, 0.0 }
0x152b   :  { %v3283_v56 = vmax.f32 %v3275_v55, 0.0 }
0x152d   :  { %4041 = vmatprep.mubr.f32.mxu0 %v3283_v56 }
0x152e   :  { %4042 = vmatmul.mubr.f32.vlgmr.msra.gmra.mxu0 %v3284_v57 }
0x15ee   :  { %v4043_v59 = vpop.f32.mrf.mxu0 }
0x15ef   :  { %v3378_v60 = vadd.f32 %v4043_v59, %v3498_v58 }
0x15f0   :  { %v3372_v61 = vpop.f32.mrf.mxu0 }
0x15f1   :  { %3382 = vst [vmem:[%s4480_s2 + $0x8] sm:$0xff] %v3378_v60  ;;  %v3373_v62 = vadd.f32 %v3498_v58, %v3372_v61 }
0x15f3   :  { %3381 = vst [vmem:[%s4480_s2] sm:$0xff] %v3373_v62 }
0x15f4   :  { %3387 = vsyncpa [#allocation3], 1 }

</bundles_post_ra>
